<compile_context>
chip_gen: v7x
topology: tpu7x:2x2x1
jax: 0.10.0
libtpu: 0.0.40
codegen_flags: <defaults>
</compile_context>

<pallas_src>
import math

import jax
import jax.numpy as jnp
import numpy as np
from jax.experimental import pallas as pl
from jax.experimental.pallas import tpu as pltpu


def _build_index_map(height: int, width: int) -> np.ndarray:
    """Exactly reproduces the PyTorch __init__ index_map construction."""
    num_img_weights = (2 * height - 1) * (2 * width - 1)
    idx_cls = num_img_weights
    idx_cls_in = num_img_weights + 1
    idx_cls_out = num_img_weights + 2
    index_map = [[idx_cls] + [idx_cls_in for _ in range(height * width)]]
    for x in range(height):
        for y in range(width):
            tmp = [idx_cls_out]
            for i in range(height):
                for j in range(width):
                    dx = x - i + height - 1
                    dy = y - j + width - 1
                    tmp.append(dx * (2 * width - 1) + dy)
            index_map.append(tmp)
    return np.asarray(index_map, dtype=np.int32)


def _gather_kernel(idx_ref, params_ref, out_ref):
    """Copy `block_rows` gathered rows from the VMEM-resident table.

    idx_ref    : SMEM (padded_entries,) int32  -- scalar-prefetched flat index map
    params_ref : VMEM (P, 1, F) f32            -- whole parameter table, resident
    out_ref    : VMEM (block_rows, F) f32      -- lane-dense output tile
    """
    block_rows = out_ref.shape[0]
    base = pl.program_id(0) * block_rows
    # Static Python unroll: `r` is a compile-time sublane offset for the store;
    # only the SMEM index read and the table-row load are dynamic.
    for r in range(block_rows):
        idx = idx_ref[base + r]
        out_ref[pl.ds(r, 1), :] = params_ref[idx]


def shared_parameter_rel_cls_forward(unique_params: jax.Array,
                                     index_map: jax.Array,
                                     *,
                                     block_rows: int = 64) -> jax.Array:
    """Pallas gather: weight[r, c] = unique_params[index_map[r, c]]."""
    n_rows, n_cols = index_map.shape
    p, in_dim, out_dim = unique_params.shape
    feat = in_dim * out_dim

    flat_idx = index_map.reshape(-1).astype(jnp.int32)
    num_entries = flat_idx.shape[0]
    num_blocks = pl.cdiv(num_entries, block_rows)
    padded_entries = num_blocks * block_rows
    if padded_entries != num_entries:
        # Pad with a valid index (0) so padded rows stay in-bounds; they are
        # sliced off in the wrapper.
        flat_idx = jnp.concatenate(
            [flat_idx,
             jnp.zeros((padded_entries - num_entries,), jnp.int32)])

    # (P, 1, F): dynamic row gather happens on the leading (non-tiled) axis,
    # feature axis F is lane-dense (multiple of 128 for typical dims).
    params_flat = unique_params.reshape(p, 1, feat)

    grid_spec = pltpu.PrefetchScalarGridSpec(
        num_scalar_prefetch=1,
        grid=(num_blocks,),
        in_specs=[
            # Whole table resident in VMEM; same block index every grid step,
            # so it is DMA'd from HBM only once.
            pl.BlockSpec((p, 1, feat), lambda i, idx_ref: (0, 0, 0)),
        ],
        out_specs=pl.BlockSpec((block_rows, feat),
                               lambda i, idx_ref: (i, 0)),
    )

    flat_out = pl.pallas_call(
        _gather_kernel,
        out_shape=jax.ShapeDtypeStruct((padded_entries, feat),
                                       unique_params.dtype),
        grid_spec=grid_spec,
        compiler_params=pltpu.CompilerParams(
            dimension_semantics=("parallel",),       # v7x: split rows over 2 TCs
            vmem_limit_bytes=32 * 1024 * 1024,       # headroom for larger dims
        ),
    )(flat_idx, params_flat)

    return flat_out[:num_entries].reshape(n_rows, n_cols, in_dim, out_dim)


def init_unique_params(key, height, width, in_dim, out_dim):
    """Deterministic kaiming_uniform_(a=sqrt(5)) equivalent."""
    num_img_weights = (2 * height - 1) * (2 * width - 1)
    shape = (num_img_weights + 3, in_dim, out_dim)
    a = math.sqrt(5)
    # torch kaiming_uniform: fan_in = size(1) * prod(size(2:)) = in_dim*out_dim
    fan_in = in_dim * out_dim
    gain = math.sqrt(2.0 / (1.0 + a * a))
    bound = gain * math.sqrt(3.0 / fan_in)
    return jax.random.uniform(key, shape, dtype=jnp.float32,
                              minval=-bound, maxval=bound)


if __name__ == "__main__":
    height, width = 4, 4          # N = 16 patches (+1 cls token)
    in_dim, out_dim = 16, 32

    key = jax.random.PRNGKey(0)
    unique_params = init_unique_params(key, height, width, in_dim, out_dim)
    index_map = jnp.asarray(_build_index_map(height, width))

    weight = shared_parameter_rel_cls_forward(unique_params, index_map)
    weight = jax.block_until_ready(weight)

    # Pure-JAX reference of the PyTorch forward: unique_params[index_map]
    ref = unique_params[index_map]
    assert weight.shape == (height * width + 1, height * width + 1,
                            in_dim, out_dim)
    np.testing.assert_allclose(np.asarray(weight), np.asarray(ref),
                               rtol=0.0, atol=0.0)
    print("KERNEL_OK")
</pallas_src>

<mosaic_0001>
module attributes {stable_mosaic.version = 11 : i64} {
  func.func @_gather_kernel(%arg0: i32, %arg1: memref<320xi32, #tpu.memory_space<smem>>, %arg2: memref<52x1x512xf32, #tpu.memory_space<vmem>>, %arg3: memref<64x512xf32, #tpu.memory_space<vmem>>) attributes {dimension_semantics = [#tpu.dimension_semantics<parallel>], iteration_bounds = array<i64: 5>, scalar_prefetch = 1 : i64, scratch_operands = 0 : i64, tpu.core_type = #tpu.core_type<tc>, window_params = [{pipeline_mode = #tpu.pipeline_mode<synchronous>, transform_indices = @transform_0, window_bounds = array<i64: 52, 1, 512>}, {transform_indices = @transform_1, window_bounds = array<i64: 64, 512>}]} {
    %c64_i32 = arith.constant 64 : i32
    %0 = arith.muli %arg0, %c64_i32 : i32
    %c0_i32 = arith.constant 0 : i32
    %1 = arith.addi %0, %c0_i32 : i32
    %2 = arith.index_cast %1 : i32 to index
    %3 = memref.load %arg1[%2] : memref<320xi32, #tpu.memory_space<smem>>
    %4 = arith.index_cast %3 : i32 to index
    %c0 = arith.constant 0 : index
    %c0_0 = arith.constant 0 : index
    %5 = vector.load %arg2[%4, %c0, %c0_0] : memref<52x1x512xf32, #tpu.memory_space<vmem>>, vector<1x1x512xf32>
    %6 = vector.shape_cast %5 : vector<1x1x512xf32> to vector<1x512xf32>
    %c0_1 = arith.constant 0 : index
    %c0_2 = arith.constant 0 : index
    %7 = vector.load %arg3[%c0_1, %c0_2] : memref<64x512xf32, #tpu.memory_space<vmem>>, vector<1x512xf32>
    tpu.vector_store %arg3[%c0_1, %c0_2], %6 {strides = array<i32>} : memref<64x512xf32, #tpu.memory_space<vmem>>, vector<1x512xf32>,
    %c1_i32 = arith.constant 1 : i32
    %8 = arith.addi %0, %c1_i32 : i32
    %9 = arith.index_cast %8 : i32 to index
    %10 = memref.load %arg1[%9] : memref<320xi32, #tpu.memory_space<smem>>
    %11 = arith.index_cast %10 : i32 to index
    %c0_3 = arith.constant 0 : index
    %c0_4 = arith.constant 0 : index
    %12 = vector.load %arg2[%11, %c0_3, %c0_4] : memref<52x1x512xf32, #tpu.memory_space<vmem>>, vector<1x1x512xf32>
    %13 = vector.shape_cast %12 : vector<1x1x512xf32> to vector<1x512xf32>
    %c1 = arith.constant 1 : index
    %c0_5 = arith.constant 0 : index
    %14 = vector.load %arg3[%c1, %c0_5] : memref<64x512xf32, #tpu.memory_space<vmem>>, vector<1x512xf32>
    tpu.vector_store %arg3[%c1, %c0_5], %13 {strides = array<i32>} : memref<64x512xf32, #tpu.memory_space<vmem>>, vector<1x512xf32>,
    %c2_i32 = arith.constant 2 : i32
    %15 = arith.addi %0, %c2_i32 : i32
    %16 = arith.index_cast %15 : i32 to index
    %17 = memref.load %arg1[%16] : memref<320xi32, #tpu.memory_space<smem>>
    %18 = arith.index_cast %17 : i32 to index
    %c0_6 = arith.constant 0 : index
    %c0_7 = arith.constant 0 : index
    %19 = vector.load %arg2[%18, %c0_6, %c0_7] : memref<52x1x512xf32, #tpu.memory_space<vmem>>, vector<1x1x512xf32>
    %20 = vector.shape_cast %19 : vector<1x1x512xf32> to vector<1x512xf32>
    %c2 = arith.constant 2 : index
    %c0_8 = arith.constant 0 : index
    %21 = vector.load %arg3[%c2, %c0_8] : memref<64x512xf32, #tpu.memory_space<vmem>>, vector<1x512xf32>
    tpu.vector_store %arg3[%c2, %c0_8], %20 {strides = array<i32>} : memref<64x512xf32, #tpu.memory_space<vmem>>, vector<1x512xf32>,
    %c3_i32 = arith.constant 3 : i32
    %22 = arith.addi %0, %c3_i32 : i32
    %23 = arith.index_cast %22 : i32 to index
    %24 = memref.load %arg1[%23] : memref<320xi32, #tpu.memory_space<smem>>
    %25 = arith.index_cast %24 : i32 to index
    %c0_9 = arith.constant 0 : index
    %c0_10 = arith.constant 0 : index
    %26 = vector.load %arg2[%25, %c0_9, %c0_10] : memref<52x1x512xf32, #tpu.memory_space<vmem>>, vector<1x1x512xf32>
    %27 = vector.shape_cast %26 : vector<1x1x512xf32> to vector<1x512xf32>
    %c3 = arith.constant 3 : index
    %c0_11 = arith.constant 0 : index
    %28 = vector.load %arg3[%c3, %c0_11] : memref<64x512xf32, #tpu.memory_space<vmem>>, vector<1x512xf32>
    tpu.vector_store %arg3[%c3, %c0_11], %27 {strides = array<i32>} : memref<64x512xf32, #tpu.memory_space<vmem>>, vector<1x512xf32>,
    %c4_i32 = arith.constant 4 : i32
    %29 = arith.addi %0, %c4_i32 : i32
    %30 = arith.index_cast %29 : i32 to index
    %31 = memref.load %arg1[%30] : memref<320xi32, #tpu.memory_space<smem>>
    %32 = arith.index_cast %31 : i32 to index
    %c0_12 = arith.constant 0 : index
    %c0_13 = arith.constant 0 : index
    %33 = vector.load %arg2[%32, %c0_12, %c0_13] : memref<52x1x512xf32, #tpu.memory_space<vmem>>, vector<1x1x512xf32>
    %34 = vector.shape_cast %33 : vector<1x1x512xf32> to vector<1x512xf32>
    %c4 = arith.constant 4 : index
    %c0_14 = arith.constant 0 : index
    %35 = vector.load %arg3[%c4, %c0_14] : memref<64x512xf32, #tpu.memory_space<vmem>>, vector<1x512xf32>
    tpu.vector_store %arg3[%c4, %c0_14], %34 {strides = array<i32>} : memref<64x512xf32, #tpu.memory_space<vmem>>, vector<1x512xf32>,
    %c5_i32 = arith.constant 5 : i32
    %36 = arith.addi %0, %c5_i32 : i32
    %37 = arith.index_cast %36 : i32 to index
    %38 = memref.load %arg1[%37] : memref<320xi32, #tpu.memory_space<smem>>
    %39 = arith.index_cast %38 : i32 to index
    %c0_15 = arith.constant 0 : index
    %c0_16 = arith.constant 0 : index
    %40 = vector.load %arg2[%39, %c0_15, %c0_16] : memref<52x1x512xf32, #tpu.memory_space<vmem>>, vector<1x1x512xf32>
    %41 = vector.shape_cast %40 : vector<1x1x512xf32> to vector<1x512xf32>
    %c5 = arith.constant 5 : index
    %c0_17 = arith.constant 0 : index
    %42 = vector.load %arg3[%c5, %c0_17] : memref<64x512xf32, #tpu.memory_space<vmem>>, vector<1x512xf32>
    tpu.vector_store %arg3[%c5, %c0_17], %41 {strides = array<i32>} : memref<64x512xf32, #tpu.memory_space<vmem>>, vector<1x512xf32>,
    %c6_i32 = arith.constant 6 : i32
    %43 = arith.addi %0, %c6_i32 : i32
    %44 = arith.index_cast %43 : i32 to index
    %45 = memref.load %arg1[%44] : memref<320xi32, #tpu.memory_space<smem>>
    %46 = arith.index_cast %45 : i32 to index
    %c0_18 = arith.constant 0 : index
    %c0_19 = arith.constant 0 : index
    %47 = vector.load %arg2[%46, %c0_18, %c0_19] : memref<52x1x512xf32, #tpu.memory_space<vmem>>, vector<1x1x512xf32>
    %48 = vector.shape_cast %47 : vector<1x1x512xf32> to vector<1x512xf32>
    %c6 = arith.constant 6 : index
    %c0_20 = arith.constant 0 : index
    %49 = vector.load %arg3[%c6, %c0_20] : memref<64x512xf32, #tpu.memory_space<vmem>>, vector<1x512xf32>
    tpu.vector_store %arg3[%c6, %c0_20], %48 {strides = array<i32>} : memref<64x512xf32, #tpu.memory_space<vmem>>, vector<1x512xf32>,
    %c7_i32 = arith.constant 7 : i32
    %50 = arith.addi %0, %c7_i32 : i32
    %51 = arith.index_cast %50 : i32 to index
    %52 = memref.load %arg1[%51] : memref<320xi32, #tpu.memory_space<smem>>
    %53 = arith.index_cast %52 : i32 to index
    %c0_21 = arith.constant 0 : index
    %c0_22 = arith.constant 0 : index
    %54 = vector.load %arg2[%53, %c0_21, %c0_22] : memref<52x1x512xf32, #tpu.memory_space<vmem>>, vector<1x1x512xf32>
    %55 = vector.shape_cast %54 : vector<1x1x512xf32> to vector<1x512xf32>
    %c7 = arith.constant 7 : index
    %c0_23 = arith.constant 0 : index
    %56 = vector.load %arg3[%c7, %c0_23] : memref<64x512xf32, #tpu.memory_space<vmem>>, vector<1x512xf32>
    tpu.vector_store %arg3[%c7, %c0_23], %55 {strides = array<i32>} : memref<64x512xf32, #tpu.memory_space<vmem>>, vector<1x512xf32>,
    %c8_i32 = arith.constant 8 : i32
    %57 = arith.addi %0, %c8_i32 : i32
    %58 = arith.index_cast %57 : i32 to index
    %59 = memref.load %arg1[%58] : memref<320xi32, #tpu.memory_space<smem>>
    %60 = arith.index_cast %59 : i32 to index
    %c0_24 = arith.constant 0 : index
    %c0_25 = arith.constant 0 : index
    %61 = vector.load %arg2[%60, %c0_24, %c0_25] : memref<52x1x512xf32, #tpu.memory_space<vmem>>, vector<1x1x512xf32>
    %62 = vector.shape_cast %61 : vector<1x1x512xf32> to vector<1x512xf32>
    %c8 = arith.constant 8 : index
    %c0_26 = arith.constant 0 : index
    %63 = vector.load %arg3[%c8, %c0_26] : memref<64x512xf32, #tpu.memory_space<vmem>>, vector<1x512xf32>
    tpu.vector_store %arg3[%c8, %c0_26], %62 {strides = array<i32>} : memref<64x512xf32, #tpu.memory_space<vmem>>, vector<1x512xf32>,
    %c9_i32 = arith.constant 9 : i32
    %64 = arith.addi %0, %c9_i32 : i32
    %65 = arith.index_cast %64 : i32 to index
    %66 = memref.load %arg1[%65] : memref<320xi32, #tpu.memory_space<smem>>
    %67 = arith.index_cast %66 : i32 to index
    %c0_27 = arith.constant 0 : index
    %c0_28 = arith.constant 0 : index
    %68 = vector.load %arg2[%67, %c0_27, %c0_28] : memref<52x1x512xf32, #tpu.memory_space<vmem>>, vector<1x1x512xf32>
    %69 = vector.shape_cast %68 : vector<1x1x512xf32> to vector<1x512xf32>
    %c9 = arith.constant 9 : index
    %c0_29 = arith.constant 0 : index
    %70 = vector.load %arg3[%c9, %c0_29] : memref<64x512xf32, #tpu.memory_space<vmem>>, vector<1x512xf32>
    tpu.vector_store %arg3[%c9, %c0_29], %69 {strides = array<i32>} : memref<64x512xf32, #tpu.memory_space<vmem>>, vector<1x512xf32>,
    %c10_i32 = arith.constant 10 : i32
    %71 = arith.addi %0, %c10_i32 : i32
    %72 = arith.index_cast %71 : i32 to index
    %73 = memref.load %arg1[%72] : memref<320xi32, #tpu.memory_space<smem>>
    %74 = arith.index_cast %73 : i32 to index
    %c0_30 = arith.constant 0 : index
    %c0_31 = arith.constant 0 : index
    %75 = vector.load %arg2[%74, %c0_30, %c0_31] : memref<52x1x512xf32, #tpu.memory_space<vmem>>, vector<1x1x512xf32>
    %76 = vector.shape_cast %75 : vector<1x1x512xf32> to vector<1x512xf32>
    %c10 = arith.constant 10 : index
    %c0_32 = arith.constant 0 : index
    %77 = vector.load %arg3[%c10, %c0_32] : memref<64x512xf32, #tpu.memory_space<vmem>>, vector<1x512xf32>
    tpu.vector_store %arg3[%c10, %c0_32], %76 {strides = array<i32>} : memref<64x512xf32, #tpu.memory_space<vmem>>, vector<1x512xf32>,
    %c11_i32 = arith.constant 11 : i32
    %78 = arith.addi %0, %c11_i32 : i32
    %79 = arith.index_cast %78 : i32 to index
    %80 = memref.load %arg1[%79] : memref<320xi32, #tpu.memory_space<smem>>
    %81 = arith.index_cast %80 : i32 to index
    %c0_33 = arith.constant 0 : index
    %c0_34 = arith.constant 0 : index
    %82 = vector.load %arg2[%81, %c0_33, %c0_34] : memref<52x1x512xf32, #tpu.memory_space<vmem>>, vector<1x1x512xf32>
    %83 = vector.shape_cast %82 : vector<1x1x512xf32> to vector<1x512xf32>
    %c11 = arith.constant 11 : index
    %c0_35 = arith.constant 0 : index
    %84 = vector.load %arg3[%c11, %c0_35] : memref<64x512xf32, #tpu.memory_space<vmem>>, vector<1x512xf32>
    tpu.vector_store %arg3[%c11, %c0_35], %83 {strides = array<i32>} : memref<64x512xf32, #tpu.memory_space<vmem>>, vector<1x512xf32>,
    %c12_i32 = arith.constant 12 : i32
    %85 = arith.addi %0, %c12_i32 : i32
    %86 = arith.index_cast %85 : i32 to index
    %87 = memref.load %arg1[%86] : memref<320xi32, #tpu.memory_space<smem>>
    %88 = arith.index_cast %87 : i32 to index
    %c0_36 = arith.constant 0 : index
    %c0_37 = arith.constant 0 : index
    %89 = vector.load %arg2[%88, %c0_36, %c0_37] : memref<52x1x512xf32, #tpu.memory_space<vmem>>, vector<1x1x512xf32>
    %90 = vector.shape_cast %89 : vector<1x1x512xf32> to vector<1x512xf32>
    %c12 = arith.constant 12 : index
    %c0_38 = arith.constant 0 : index
    %91 = vector.load %arg3[%c12, %c0_38] : memref<64x512xf32, #tpu.memory_space<vmem>>, vector<1x512xf32>
    tpu.vector_store %arg3[%c12, %c0_38], %90 {strides = array<i32>} : memref<64x512xf32, #tpu.memory_space<vmem>>, vector<1x512xf32>,
    %c13_i32 = arith.constant 13 : i32
    %92 = arith.addi %0, %c13_i32 : i32
    %93 = arith.index_cast %92 : i32 to index
    %94 = memref.load %arg1[%93] : memref<320xi32, #tpu.memory_space<smem>>
    %95 = arith.index_cast %94 : i32 to index
    %c0_39 = arith.constant 0 : index
    %c0_40 = arith.constant 0 : index
    %96 = vector.load %arg2[%95, %c0_39, %c0_40] : memref<52x1x512xf32, #tpu.memory_space<vmem>>, vector<1x1x512xf32>
    %97 = vector.shape_cast %96 : vector<1x1x512xf32> to vector<1x512xf32>
    %c13 = arith.constant 13 : index
    %c0_41 = arith.constant 0 : index
    %98 = vector.load %arg3[%c13, %c0_41] : memref<64x512xf32, #tpu.memory_space<vmem>>, vector<1x512xf32>
    tpu.vector_store %arg3[%c13, %c0_41], %97 {strides = array<i32>} : memref<64x512xf32, #tpu.memory_space<vmem>>, vector<1x512xf32>,
    %c14_i32 = arith.constant 14 : i32
    %99 = arith.addi %0, %c14_i32 : i32
    %100 = arith.index_cast %99 : i32 to index
    %101 = memref.load %arg1[%100] : memref<320xi32, #tpu.memory_space<smem>>
    %102 = arith.index_cast %101 : i32 to index
    %c0_42 = arith.constant 0 : index
    %c0_43 = arith.constant 0 : index
    %103 = vector.load %arg2[%102, %c0_42, %c0_43] : memref<52x1x512xf32, #tpu.memory_space<vmem>>, vector<1x1x512xf32>
    %104 = vector.shape_cast %103 : vector<1x1x512xf32> to vector<1x512xf32>
    %c14 = arith.constant 14 : index
    %c0_44 = arith.constant 0 : index
    %105 = vector.load %arg3[%c14, %c0_44] : memref<64x512xf32, #tpu.memory_space<vmem>>, vector<1x512xf32>
    tpu.vector_store %arg3[%c14, %c0_44], %104 {strides = array<i32>} : memref<64x512xf32, #tpu.memory_space<vmem>>, vector<1x512xf32>,
    %c15_i32 = arith.constant 15 : i32
    %106 = arith.addi %0, %c15_i32 : i32
    %107 = arith.index_cast %106 : i32 to index
    %108 = memref.load %arg1[%107] : memref<320xi32, #tpu.memory_space<smem>>
    %109 = arith.index_cast %108 : i32 to index
    %c0_45 = arith.constant 0 : index
    %c0_46 = arith.constant 0 : index
    %110 = vector.load %arg2[%109, %c0_45, %c0_46] : memref<52x1x512xf32, #tpu.memory_space<vmem>>, vector<1x1x512xf32>
    %111 = vector.shape_cast %110 : vector<1x1x512xf32> to vector<1x512xf32>
    %c15 = arith.constant 15 : index
    %c0_47 = arith.constant 0 : index
    %112 = vector.load %arg3[%c15, %c0_47] : memref<64x512xf32, #tpu.memory_space<vmem>>, vector<1x512xf32>
    tpu.vector_store %arg3[%c15, %c0_47], %111 {strides = array<i32>} : memref<64x512xf32, #tpu.memory_space<vmem>>, vector<1x512xf32>,
    %c16_i32 = arith.constant 16 : i32
    %113 = arith.addi %0, %c16_i32 : i32
    %114 = arith.index_cast %113 : i32 to index
    %115 = memref.load %arg1[%114] : memref<320xi32, #tpu.memory_space<smem>>
    %116 = arith.index_cast %115 : i32 to index
    %c0_48 = arith.constant 0 : index
    %c0_49 = arith.constant 0 : index
    %117 = vector.load %arg2[%116, %c0_48, %c0_49] : memref<52x1x512xf32, #tpu.memory_space<vmem>>, vector<1x1x512xf32>
    %118 = vector.shape_cast %117 : vector<1x1x512xf32> to vector<1x512xf32>
    %c16 = arith.constant 16 : index
    %c0_50 = arith.constant 0 : index
    %119 = vector.load %arg3[%c16, %c0_50] : memref<64x512xf32, #tpu.memory_space<vmem>>, vector<1x512xf32>
    tpu.vector_store %arg3[%c16, %c0_50], %118 {strides = array<i32>} : memref<64x512xf32, #tpu.memory_space<vmem>>, vector<1x512xf32>,
    %c17_i32 = arith.constant 17 : i32
    %120 = arith.addi %0, %c17_i32 : i32
    %121 = arith.index_cast %120 : i32 to index
    %122 = memref.load %arg1[%121] : memref<320xi32, #tpu.memory_space<smem>>
    %123 = arith.index_cast %122 : i32 to index
    %c0_51 = arith.constant 0 : index
    %c0_52 = arith.constant 0 : index
    %124 = vector.load %arg2[%123, %c0_51, %c0_52] : memref<52x1x512xf32, #tpu.memory_space<vmem>>, vector<1x1x512xf32>
    %125 = vector.shape_cast %124 : vector<1x1x512xf32> to vector<1x512xf32>
    %c17 = arith.constant 17 : index
    %c0_53 = arith.constant 0 : index
    %126 = vector.load %arg3[%c17, %c0_53] : memref<64x512xf32, #tpu.memory_space<vmem>>, vector<1x512xf32>
    tpu.vector_store %arg3[%c17, %c0_53], %125 {strides = array<i32>} : memref<64x512xf32, #tpu.memory_space<vmem>>, vector<1x512xf32>,
    %c18_i32 = arith.constant 18 : i32
    %127 = arith.addi %0, %c18_i32 : i32
    %128 = arith.index_cast %127 : i32 to index
    %129 = memref.load %arg1[%128] : memref<320xi32, #tpu.memory_space<smem>>
    %130 = arith.index_cast %129 : i32 to index
    %c0_54 = arith.constant 0 : index
    %c0_55 = arith.constant 0 : index
    %131 = vector.load %arg2[%130, %c0_54, %c0_55] : memref<52x1x512xf32, #tpu.memory_space<vmem>>, vector<1x1x512xf32>
    %132 = vector.shape_cast %131 : vector<1x1x512xf32> to vector<1x512xf32>
    %c18 = arith.constant 18 : index
    %c0_56 = arith.constant 0 : index
    %133 = vector.load %arg3[%c18, %c0_56] : memref<64x512xf32, #tpu.memory_space<vmem>>, vector<1x512xf32>
    tpu.vector_store %arg3[%c18, %c0_56], %132 {strides = array<i32>} : memref<64x512xf32, #tpu.memory_space<vmem>>, vector<1x512xf32>,
    %c19_i32 = arith.constant 19 : i32
    %134 = arith.addi %0, %c19_i32 : i32
    %135 = arith.index_cast %134 : i32 to index
    %136 = memref.load %arg1[%135] : memref<320xi32, #tpu.memory_space<smem>>
    %137 = arith.index_cast %136 : i32 to index
    %c0_57 = arith.constant 0 : index
    %c0_58 = arith.constant 0 : index
    %138 = vector.load %arg2[%137, %c0_57, %c0_58] : memref<52x1x512xf32, #tpu.memory_space<vmem>>, vector<1x1x512xf32>
    %139 = vector.shape_cast %138 : vector<1x1x512xf32> to vector<1x512xf32>
    %c19 = arith.constant 19 : index
    %c0_59 = arith.constant 0 : index
    %140 = vector.load %arg3[%c19, %c0_59] : memref<64x512xf32, #tpu.memory_space<vmem>>, vector<1x512xf32>
    tpu.vector_store %arg3[%c19, %c0_59], %139 {strides = array<i32>} : memref<64x512xf32, #tpu.memory_space<vmem>>, vector<1x512xf32>,
    %c20_i32 = arith.constant 20 : i32
    %141 = arith.addi %0, %c20_i32 : i32
    %142 = arith.index_cast %141 : i32 to index
    %143 = memref.load %arg1[%142] : memref<320xi32, #tpu.memory_space<smem>>
    %144 = arith.index_cast %143 : i32 to index
    %c0_60 = arith.constant 0 : index
    %c0_61 = arith.constant 0 : index
    %145 = vector.load %arg2[%144, %c0_60, %c0_61] : memref<52x1x512xf32, #tpu.memory_space<vmem>>, vector<1x1x512xf32>
    %146 = vector.shape_cast %145 : vector<1x1x512xf32> to vector<1x512xf32>
    %c20 = arith.constant 20 : index
    %c0_62 = arith.constant 0 : index
    %147 = vector.load %arg3[%c20, %c0_62] : memref<64x512xf32, #tpu.memory_space<vmem>>, vector<1x512xf32>
    tpu.vector_store %arg3[%c20, %c0_62], %146 {strides = array<i32>} : memref<64x512xf32, #tpu.memory_space<vmem>>, vector<1x512xf32>,
    %c21_i32 = arith.constant 21 : i32
    %148 = arith.addi %0, %c21_i32 : i32
    %149 = arith.index_cast %148 : i32 to index
    %150 = memref.load %arg1[%149] : memref<320xi32, #tpu.memory_space<smem>>
    %151 = arith.index_cast %150 : i32 to index
    %c0_63 = arith.constant 0 : index
    %c0_64 = arith.constant 0 : index
    %152 = vector.load %arg2[%151, %c0_63, %c0_64] : memref<52x1x512xf32, #tpu.memory_space<vmem>>, vector<1x1x512xf32>
    %153 = vector.shape_cast %152 : vector<1x1x512xf32> to vector<1x512xf32>
    %c21 = arith.constant 21 : index
    %c0_65 = arith.constant 0 : index
    %154 = vector.load %arg3[%c21, %c0_65] : memref<64x512xf32, #tpu.memory_space<vmem>>, vector<1x512xf32>
    tpu.vector_store %arg3[%c21, %c0_65], %153 {strides = array<i32>} : memref<64x512xf32, #tpu.memory_space<vmem>>, vector<1x512xf32>,
    %c22_i32 = arith.constant 22 : i32
    %155 = arith.addi %0, %c22_i32 : i32
    %156 = arith.index_cast %155 : i32 to index
    %157 = memref.load %arg1[%156] : memref<320xi32, #tpu.memory_space<smem>>
    %158 = arith.index_cast %157 : i32 to index
    %c0_66 = arith.constant 0 : index
    %c0_67 = arith.constant 0 : index
    %159 = vector.load %arg2[%158, %c0_66, %c0_67] : memref<52x1x512xf32, #tpu.memory_space<vmem>>, vector<1x1x512xf32>
    %160 = vector.shape_cast %159 : vector<1x1x512xf32> to vector<1x512xf32>
    %c22 = arith.constant 22 : index
    %c0_68 = arith.constant 0 : index
    %161 = vector.load %arg3[%c22, %c0_68] : memref<64x512xf32, #tpu.memory_space<vmem>>, vector<1x512xf32>
    tpu.vector_store %arg3[%c22, %c0_68], %160 {strides = array<i32>} : memref<64x512xf32, #tpu.memory_space<vmem>>, vector<1x512xf32>,
    %c23_i32 = arith.constant 23 : i32
    %162 = arith.addi %0, %c23_i32 : i32
    %163 = arith.index_cast %162 : i32 to index
    %164 = memref.load %arg1[%163] : memref<320xi32, #tpu.memory_space<smem>>
    %165 = arith.index_cast %164 : i32 to index
    %c0_69 = arith.constant 0 : index
    %c0_70 = arith.constant 0 : index
    %166 = vector.load %arg2[%165, %c0_69, %c0_70] : memref<52x1x512xf32, #tpu.memory_space<vmem>>, vector<1x1x512xf32>
    %167 = vector.shape_cast %166 : vector<1x1x512xf32> to vector<1x512xf32>
    %c23 = arith.constant 23 : index
    %c0_71 = arith.constant 0 : index
    %168 = vector.load %arg3[%c23, %c0_71] : memref<64x512xf32, #tpu.memory_space<vmem>>, vector<1x512xf32>
    tpu.vector_store %arg3[%c23, %c0_71], %167 {strides = array<i32>} : memref<64x512xf32, #tpu.memory_space<vmem>>, vector<1x512xf32>,
    %c24_i32 = arith.constant 24 : i32
    %169 = arith.addi %0, %c24_i32 : i32
    %170 = arith.index_cast %169 : i32 to index
    %171 = memref.load %arg1[%170] : memref<320xi32, #tpu.memory_space<smem>>
    %172 = arith.index_cast %171 : i32 to index
    %c0_72 = arith.constant 0 : index
    %c0_73 = arith.constant 0 : index
    %173 = vector.load %arg2[%172, %c0_72, %c0_73] : memref<52x1x512xf32, #tpu.memory_space<vmem>>, vector<1x1x512xf32>
    %174 = vector.shape_cast %173 : vector<1x1x512xf32> to vector<1x512xf32>
    %c24 = arith.constant 24 : index
    %c0_74 = arith.constant 0 : index
    %175 = vector.load %arg3[%c24, %c0_74] : memref<64x512xf32, #tpu.memory_space<vmem>>, vector<1x512xf32>
    tpu.vector_store %arg3[%c24, %c0_74], %174 {strides = array<i32>} : memref<64x512xf32, #tpu.memory_space<vmem>>, vector<1x512xf32>,
    %c25_i32 = arith.constant 25 : i32
    %176 = arith.addi %0, %c25_i32 : i32
    %177 = arith.index_cast %176 : i32 to index
    %178 = memref.load %arg1[%177] : memref<320xi32, #tpu.memory_space<smem>>
    %179 = arith.index_cast %178 : i32 to index
    %c0_75 = arith.constant 0 : index
    %c0_76 = arith.constant 0 : index
    %180 = vector.load %arg2[%179, %c0_75, %c0_76] : memref<52x1x512xf32, #tpu.memory_space<vmem>>, vector<1x1x512xf32>
    %181 = vector.shape_cast %180 : vector<1x1x512xf32> to vector<1x512xf32>
    %c25 = arith.constant 25 : index
    %c0_77 = arith.constant 0 : index
    %182 = vector.load %arg3[%c25, %c0_77] : memref<64x512xf32, #tpu.memory_space<vmem>>, vector<1x512xf32>
    tpu.vector_store %arg3[%c25, %c0_77], %181 {strides = array<i32>} : memref<64x512xf32, #tpu.memory_space<vmem>>, vector<1x512xf32>,
    %c26_i32 = arith.constant 26 : i32
    %183 = arith.addi %0, %c26_i32 : i32
    %184 = arith.index_cast %183 : i32 to index
    %185 = memref.load %arg1[%184] : memref<320xi32, #tpu.memory_space<smem>>
    %186 = arith.index_cast %185 : i32 to index
    %c0_78 = arith.constant 0 : index
    %c0_79 = arith.constant 0 : index
    %187 = vector.load %arg2[%186, %c0_78, %c0_79] : memref<52x1x512xf32, #tpu.memory_space<vmem>>, vector<1x1x512xf32>
    %188 = vector.shape_cast %187 : vector<1x1x512xf32> to vector<1x512xf32>
    %c26 = arith.constant 26 : index
    %c0_80 = arith.constant 0 : index
    %189 = vector.load %arg3[%c26, %c0_80] : memref<64x512xf32, #tpu.memory_space<vmem>>, vector<1x512xf32>
    tpu.vector_store %arg3[%c26, %c0_80], %188 {strides = array<i32>} : memref<64x512xf32, #tpu.memory_space<vmem>>, vector<1x512xf32>,
    %c27_i32 = arith.constant 27 : i32
    %190 = arith.addi %0, %c27_i32 : i32
    %191 = arith.index_cast %190 : i32 to index
    %192 = memref.load %arg1[%191] : memref<320xi32, #tpu.memory_space<smem>>
    %193 = arith.index_cast %192 : i32 to index
    %c0_81 = arith.constant 0 : index
    %c0_82 = arith.constant 0 : index
    %194 = vector.load %arg2[%193, %c0_81, %c0_82] : memref<52x1x512xf32, #tpu.memory_space<vmem>>, vector<1x1x512xf32>
    %195 = vector.shape_cast %194 : vector<1x1x512xf32> to vector<1x512xf32>
    %c27 = arith.constant 27 : index
    %c0_83 = arith.constant 0 : index
    %196 = vector.load %arg3[%c27, %c0_83] : memref<64x512xf32, #tpu.memory_space<vmem>>, vector<1x512xf32>
    tpu.vector_store %arg3[%c27, %c0_83], %195 {strides = array<i32>} : memref<64x512xf32, #tpu.memory_space<vmem>>, vector<1x512xf32>,
    %c28_i32 = arith.constant 28 : i32
    %197 = arith.addi %0, %c28_i32 : i32
    %198 = arith.index_cast %197 : i32 to index
    %199 = memref.load %arg1[%198] : memref<320xi32, #tpu.memory_space<smem>>
    %200 = arith.index_cast %199 : i32 to index
    %c0_84 = arith.constant 0 : index
    %c0_85 = arith.constant 0 : index
    %201 = vector.load %arg2[%200, %c0_84, %c0_85] : memref<52x1x512xf32, #tpu.memory_space<vmem>>, vector<1x1x512xf32>
    %202 = vector.shape_cast %201 : vector<1x1x512xf32> to vector<1x512xf32>
    %c28 = arith.constant 28 : index
    %c0_86 = arith.constant 0 : index
    %203 = vector.load %arg3[%c28, %c0_86] : memref<64x512xf32, #tpu.memory_space<vmem>>, vector<1x512xf32>
    tpu.vector_store %arg3[%c28, %c0_86], %202 {strides = array<i32>} : memref<64x512xf32, #tpu.memory_space<vmem>>, vector<1x512xf32>,
    %c29_i32 = arith.constant 29 : i32
    %204 = arith.addi %0, %c29_i32 : i32
    %205 = arith.index_cast %204 : i32 to index
    %206 = memref.load %arg1[%205] : memref<320xi32, #tpu.memory_space<smem>>
    %207 = arith.index_cast %206 : i32 to index
    %c0_87 = arith.constant 0 : index
    %c0_88 = arith.constant 0 : index
    %208 = vector.load %arg2[%207, %c0_87, %c0_88] : memref<52x1x512xf32, #tpu.memory_space<vmem>>, vector<1x1x512xf32>
    %209 = vector.shape_cast %208 : vector<1x1x512xf32> to vector<1x512xf32>
    %c29 = arith.constant 29 : index
    %c0_89 = arith.constant 0 : index
    %210 = vector.load %arg3[%c29, %c0_89] : memref<64x512xf32, #tpu.memory_space<vmem>>, vector<1x512xf32>
    tpu.vector_store %arg3[%c29, %c0_89], %209 {strides = array<i32>} : memref<64x512xf32, #tpu.memory_space<vmem>>, vector<1x512xf32>,
    %c30_i32 = arith.constant 30 : i32
    %211 = arith.addi %0, %c30_i32 : i32
    %212 = arith.index_cast %211 : i32 to index
    %213 = memref.load %arg1[%212] : memref<320xi32, #tpu.memory_space<smem>>
    %214 = arith.index_cast %213 : i32 to index
    %c0_90 = arith.constant 0 : index
    %c0_91 = arith.constant 0 : index
    %215 = vector.load %arg2[%214, %c0_90, %c0_91] : memref<52x1x512xf32, #tpu.memory_space<vmem>>, vector<1x1x512xf32>
    %216 = vector.shape_cast %215 : vector<1x1x512xf32> to vector<1x512xf32>
    %c30 = arith.constant 30 : index
    %c0_92 = arith.constant 0 : index
    %217 = vector.load %arg3[%c30, %c0_92] : memref<64x512xf32, #tpu.memory_space<vmem>>, vector<1x512xf32>
    tpu.vector_store %arg3[%c30, %c0_92], %216 {strides = array<i32>} : memref<64x512xf32, #tpu.memory_space<vmem>>, vector<1x512xf32>,
    %c31_i32 = arith.constant 31 : i32
    %218 = arith.addi %0, %c31_i32 : i32
    %219 = arith.index_cast %218 : i32 to index
    %220 = memref.load %arg1[%219] : memref<320xi32, #tpu.memory_space<smem>>
    %221 = arith.index_cast %220 : i32 to index
    %c0_93 = arith.constant 0 : index
    %c0_94 = arith.constant 0 : index
    %222 = vector.load %arg2[%221, %c0_93, %c0_94] : memref<52x1x512xf32, #tpu.memory_space<vmem>>, vector<1x1x512xf32>
    %223 = vector.shape_cast %222 : vector<1x1x512xf32> to vector<1x512xf32>
    %c31 = arith.constant 31 : index
    %c0_95 = arith.constant 0 : index
    %224 = vector.load %arg3[%c31, %c0_95] : memref<64x512xf32, #tpu.memory_space<vmem>>, vector<1x512xf32>
    tpu.vector_store %arg3[%c31, %c0_95], %223 {strides = array<i32>} : memref<64x512xf32, #tpu.memory_space<vmem>>, vector<1x512xf32>,
    %c32_i32 = arith.constant 32 : i32
    %225 = arith.addi %0, %c32_i32 : i32
    %226 = arith.index_cast %225 : i32 to index
    %227 = memref.load %arg1[%226] : memref<320xi32, #tpu.memory_space<smem>>
    %228 = arith.index_cast %227 : i32 to index
    %c0_96 = arith.constant 0 : index
    %c0_97 = arith.constant 0 : index
    %229 = vector.load %arg2[%228, %c0_96, %c0_97] : memref<52x1x512xf32, #tpu.memory_space<vmem>>, vector<1x1x512xf32>
    %230 = vector.shape_cast %229 : vector<1x1x512xf32> to vector<1x512xf32>
    %c32 = arith.constant 32 : index
    %c0_98 = arith.constant 0 : index
    %231 = vector.load %arg3[%c32, %c0_98] : memref<64x512xf32, #tpu.memory_space<vmem>>, vector<1x512xf32>
    tpu.vector_store %arg3[%c32, %c0_98], %230 {strides = array<i32>} : memref<64x512xf32, #tpu.memory_space<vmem>>, vector<1x512xf32>,
    %c33_i32 = arith.constant 33 : i32
    %232 = arith.addi %0, %c33_i32 : i32
    %233 = arith.index_cast %232 : i32 to index
    %234 = memref.load %arg1[%233] : memref<320xi32, #tpu.memory_space<smem>>
    %235 = arith.index_cast %234 : i32 to index
    %c0_99 = arith.constant 0 : index
    %c0_100 = arith.constant 0 : index
    %236 = vector.load %arg2[%235, %c0_99, %c0_100] : memref<52x1x512xf32, #tpu.memory_space<vmem>>, vector<1x1x512xf32>
    %237 = vector.shape_cast %236 : vector<1x1x512xf32> to vector<1x512xf32>
    %c33 = arith.constant 33 : index
    %c0_101 = arith.constant 0 : index
    %238 = vector.load %arg3[%c33, %c0_101] : memref<64x512xf32, #tpu.memory_space<vmem>>, vector<1x512xf32>
    tpu.vector_store %arg3[%c33, %c0_101], %237 {strides = array<i32>} : memref<64x512xf32, #tpu.memory_space<vmem>>, vector<1x512xf32>,
    %c34_i32 = arith.constant 34 : i32
    %239 = arith.addi %0, %c34_i32 : i32
    %240 = arith.index_cast %239 : i32 to index
    %241 = memref.load %arg1[%240] : memref<320xi32, #tpu.memory_space<smem>>
    %242 = arith.index_cast %241 : i32 to index
    %c0_102 = arith.constant 0 : index
    %c0_103 = arith.constant 0 : index
    %243 = vector.load %arg2[%242, %c0_102, %c0_103] : memref<52x1x512xf32, #tpu.memory_space<vmem>>, vector<1x1x512xf32>
    %244 = vector.shape_cast %243 : vector<1x1x512xf32> to vector<1x512xf32>
    %c34 = arith.constant 34 : index
    %c0_104 = arith.constant 0 : index
    %245 = vector.load %arg3[%c34, %c0_104] : memref<64x512xf32, #tpu.memory_space<vmem>>, vector<1x512xf32>
    tpu.vector_store %arg3[%c34, %c0_104], %244 {strides = array<i32>} : memref<64x512xf32, #tpu.memory_space<vmem>>, vector<1x512xf32>,
    %c35_i32 = arith.constant 35 : i32
    %246 = arith.addi %0, %c35_i32 : i32
    %247 = arith.index_cast %246 : i32 to index
    %248 = memref.load %arg1[%247] : memref<320xi32, #tpu.memory_space<smem>>
    %249 = arith.index_cast %248 : i32 to index
    %c0_105 = arith.constant 0 : index
    %c0_106 = arith.constant 0 : index
    %250 = vector.load %arg2[%249, %c0_105, %c0_106] : memref<52x1x512xf32, #tpu.memory_space<vmem>>, vector<1x1x512xf32>
    %251 = vector.shape_cast %250 : vector<1x1x512xf32> to vector<1x512xf32>
    %c35 = arith.constant 35 : index
    %c0_107 = arith.constant 0 : index
    %252 = vector.load %arg3[%c35, %c0_107] : memref<64x512xf32, #tpu.memory_space<vmem>>, vector<1x512xf32>
    tpu.vector_store %arg3[%c35, %c0_107], %251 {strides = array<i32>} : memref<64x512xf32, #tpu.memory_space<vmem>>, vector<1x512xf32>,
    %c36_i32 = arith.constant 36 : i32
    %253 = arith.addi %0, %c36_i32 : i32
    %254 = arith.index_cast %253 : i32 to index
    %255 = memref.load %arg1[%254] : memref<320xi32, #tpu.memory_space<smem>>
    %256 = arith.index_cast %255 : i32 to index
    %c0_108 = arith.constant 0 : index
    %c0_109 = arith.constant 0 : index
    %257 = vector.load %arg2[%256, %c0_108, %c0_109] : memref<52x1x512xf32, #tpu.memory_space<vmem>>, vector<1x1x512xf32>
    %258 = vector.shape_cast %257 : vector<1x1x512xf32> to vector<1x512xf32>
    %c36 = arith.constant 36 : index
    %c0_110 = arith.constant 0 : index
    %259 = vector.load %arg3[%c36, %c0_110] : memref<64x512xf32, #tpu.memory_space<vmem>>, vector<1x512xf32>
    tpu.vector_store %arg3[%c36, %c0_110], %258 {strides = array<i32>} : memref<64x512xf32, #tpu.memory_space<vmem>>, vector<1x512xf32>,
    %c37_i32 = arith.constant 37 : i32
    %260 = arith.addi %0, %c37_i32 : i32
    %261 = arith.index_cast %260 : i32 to index
    %262 = memref.load %arg1[%261] : memref<320xi32, #tpu.memory_space<smem>>
    %263 = arith.index_cast %262 : i32 to index
    %c0_111 = arith.constant 0 : index
    %c0_112 = arith.constant 0 : index
    %264 = vector.load %arg2[%263, %c0_111, %c0_112] : memref<52x1x512xf32, #tpu.memory_space<vmem>>, vector<1x1x512xf32>
    %265 = vector.shape_cast %264 : vector<1x1x512xf32> to vector<1x512xf32>
    %c37 = arith.constant 37 : index
    %c0_113 = arith.constant 0 : index
    %266 = vector.load %arg3[%c37, %c0_113] : memref<64x512xf32, #tpu.memory_space<vmem>>, vector<1x512xf32>
    tpu.vector_store %arg3[%c37, %c0_113], %265 {strides = array<i32>} : memref<64x512xf32, #tpu.memory_space<vmem>>, vector<1x512xf32>,
    %c38_i32 = arith.constant 38 : i32
    %267 = arith.addi %0, %c38_i32 : i32
    %268 = arith.index_cast %267 : i32 to index
    %269 = memref.load %arg1[%268] : memref<320xi32, #tpu.memory_space<smem>>
    %270 = arith.index_cast %269 : i32 to index
    %c0_114 = arith.constant 0 : index
    %c0_115 = arith.constant 0 : index
    %271 = vector.load %arg2[%270, %c0_114, %c0_115] : memref<52x1x512xf32, #tpu.memory_space<vmem>>, vector<1x1x512xf32>
    %272 = vector.shape_cast %271 : vector<1x1x512xf32> to vector<1x512xf32>
    %c38 = arith.constant 38 : index
    %c0_116 = arith.constant 0 : index
    %273 = vector.load %arg3[%c38, %c0_116] : memref<64x512xf32, #tpu.memory_space<vmem>>, vector<1x512xf32>
    tpu.vector_store %arg3[%c38, %c0_116], %272 {strides = array<i32>} : memref<64x512xf32, #tpu.memory_space<vmem>>, vector<1x512xf32>,
    %c39_i32 = arith.constant 39 : i32
    %274 = arith.addi %0, %c39_i32 : i32
    %275 = arith.index_cast %274 : i32 to index
    %276 = memref.load %arg1[%275] : memref<320xi32, #tpu.memory_space<smem>>
    %277 = arith.index_cast %276 : i32 to index
    %c0_117 = arith.constant 0 : index
    %c0_118 = arith.constant 0 : index
    %278 = vector.load %arg2[%277, %c0_117, %c0_118] : memref<52x1x512xf32, #tpu.memory_space<vmem>>, vector<1x1x512xf32>
    %279 = vector.shape_cast %278 : vector<1x1x512xf32> to vector<1x512xf32>
    %c39 = arith.constant 39 : index
    %c0_119 = arith.constant 0 : index
    %280 = vector.load %arg3[%c39, %c0_119] : memref<64x512xf32, #tpu.memory_space<vmem>>, vector<1x512xf32>
    tpu.vector_store %arg3[%c39, %c0_119], %279 {strides = array<i32>} : memref<64x512xf32, #tpu.memory_space<vmem>>, vector<1x512xf32>,
    %c40_i32 = arith.constant 40 : i32
    %281 = arith.addi %0, %c40_i32 : i32
    %282 = arith.index_cast %281 : i32 to index
    %283 = memref.load %arg1[%282] : memref<320xi32, #tpu.memory_space<smem>>
    %284 = arith.index_cast %283 : i32 to index
    %c0_120 = arith.constant 0 : index
    %c0_121 = arith.constant 0 : index
    %285 = vector.load %arg2[%284, %c0_120, %c0_121] : memref<52x1x512xf32, #tpu.memory_space<vmem>>, vector<1x1x512xf32>
    %286 = vector.shape_cast %285 : vector<1x1x512xf32> to vector<1x512xf32>
    %c40 = arith.constant 40 : index
    %c0_122 = arith.constant 0 : index
    %287 = vector.load %arg3[%c40, %c0_122] : memref<64x512xf32, #tpu.memory_space<vmem>>, vector<1x512xf32>
    tpu.vector_store %arg3[%c40, %c0_122], %286 {strides = array<i32>} : memref<64x512xf32, #tpu.memory_space<vmem>>, vector<1x512xf32>,
    %c41_i32 = arith.constant 41 : i32
    %288 = arith.addi %0, %c41_i32 : i32
    %289 = arith.index_cast %288 : i32 to index
    %290 = memref.load %arg1[%289] : memref<320xi32, #tpu.memory_space<smem>>
    %291 = arith.index_cast %290 : i32 to index
    %c0_123 = arith.constant 0 : index
    %c0_124 = arith.constant 0 : index
    %292 = vector.load %arg2[%291, %c0_123, %c0_124] : memref<52x1x512xf32, #tpu.memory_space<vmem>>, vector<1x1x512xf32>
    %293 = vector.shape_cast %292 : vector<1x1x512xf32> to vector<1x512xf32>
    %c41 = arith.constant 41 : index
    %c0_125 = arith.constant 0 : index
    %294 = vector.load %arg3[%c41, %c0_125] : memref<64x512xf32, #tpu.memory_space<vmem>>, vector<1x512xf32>
    tpu.vector_store %arg3[%c41, %c0_125], %293 {strides = array<i32>} : memref<64x512xf32, #tpu.memory_space<vmem>>, vector<1x512xf32>,
    %c42_i32 = arith.constant 42 : i32
    %295 = arith.addi %0, %c42_i32 : i32
    %296 = arith.index_cast %295 : i32 to index
    %297 = memref.load %arg1[%296] : memref<320xi32, #tpu.memory_space<smem>>
    %298 = arith.index_cast %297 : i32 to index
    %c0_126 = arith.constant 0 : index
    %c0_127 = arith.constant 0 : index
    %299 = vector.load %arg2[%298, %c0_126, %c0_127] : memref<52x1x512xf32, #tpu.memory_space<vmem>>, vector<1x1x512xf32>
    %300 = vector.shape_cast %299 : vector<1x1x512xf32> to vector<1x512xf32>
    %c42 = arith.constant 42 : index
    %c0_128 = arith.constant 0 : index
    %301 = vector.load %arg3[%c42, %c0_128] : memref<64x512xf32, #tpu.memory_space<vmem>>, vector<1x512xf32>
    tpu.vector_store %arg3[%c42, %c0_128], %300 {strides = array<i32>} : memref<64x512xf32, #tpu.memory_space<vmem>>, vector<1x512xf32>,
    %c43_i32 = arith.constant 43 : i32
    %302 = arith.addi %0, %c43_i32 : i32
    %303 = arith.index_cast %302 : i32 to index
    %304 = memref.load %arg1[%303] : memref<320xi32, #tpu.memory_space<smem>>
    %305 = arith.index_cast %304 : i32 to index
    %c0_129 = arith.constant 0 : index
    %c0_130 = arith.constant 0 : index
    %306 = vector.load %arg2[%305, %c0_129, %c0_130] : memref<52x1x512xf32, #tpu.memory_space<vmem>>, vector<1x1x512xf32>
    %307 = vector.shape_cast %306 : vector<1x1x512xf32> to vector<1x512xf32>
    %c43 = arith.constant 43 : index
    %c0_131 = arith.constant 0 : index
    %308 = vector.load %arg3[%c43, %c0_131] : memref<64x512xf32, #tpu.memory_space<vmem>>, vector<1x512xf32>
    tpu.vector_store %arg3[%c43, %c0_131], %307 {strides = array<i32>} : memref<64x512xf32, #tpu.memory_space<vmem>>, vector<1x512xf32>,
    %c44_i32 = arith.constant 44 : i32
    %309 = arith.addi %0, %c44_i32 : i32
    %310 = arith.index_cast %309 : i32 to index
    %311 = memref.load %arg1[%310] : memref<320xi32, #tpu.memory_space<smem>>
    %312 = arith.index_cast %311 : i32 to index
    %c0_132 = arith.constant 0 : index
    %c0_133 = arith.constant 0 : index
    %313 = vector.load %arg2[%312, %c0_132, %c0_133] : memref<52x1x512xf32, #tpu.memory_space<vmem>>, vector<1x1x512xf32>
    %314 = vector.shape_cast %313 : vector<1x1x512xf32> to vector<1x512xf32>
    %c44 = arith.constant 44 : index
    %c0_134 = arith.constant 0 : index
    %315 = vector.load %arg3[%c44, %c0_134] : memref<64x512xf32, #tpu.memory_space<vmem>>, vector<1x512xf32>
    tpu.vector_store %arg3[%c44, %c0_134], %314 {strides = array<i32>} : memref<64x512xf32, #tpu.memory_space<vmem>>, vector<1x512xf32>,
    %c45_i32 = arith.constant 45 : i32
    %316 = arith.addi %0, %c45_i32 : i32
    %317 = arith.index_cast %316 : i32 to index
    %318 = memref.load %arg1[%317] : memref<320xi32, #tpu.memory_space<smem>>
    %319 = arith.index_cast %318 : i32 to index
    %c0_135 = arith.constant 0 : index
    %c0_136 = arith.constant 0 : index
    %320 = vector.load %arg2[%319, %c0_135, %c0_136] : memref<52x1x512xf32, #tpu.memory_space<vmem>>, vector<1x1x512xf32>
    %321 = vector.shape_cast %320 : vector<1x1x512xf32> to vector<1x512xf32>
    %c45 = arith.constant 45 : index
    %c0_137 = arith.constant 0 : index
    %322 = vector.load %arg3[%c45, %c0_137] : memref<64x512xf32, #tpu.memory_space<vmem>>, vector<1x512xf32>
    tpu.vector_store %arg3[%c45, %c0_137], %321 {strides = array<i32>} : memref<64x512xf32, #tpu.memory_space<vmem>>, vector<1x512xf32>,
    %c46_i32 = arith.constant 46 : i32
    %323 = arith.addi %0, %c46_i32 : i32
    %324 = arith.index_cast %323 : i32 to index
    %325 = memref.load %arg1[%324] : memref<320xi32, #tpu.memory_space<smem>>
    %326 = arith.index_cast %325 : i32 to index
    %c0_138 = arith.constant 0 : index
    %c0_139 = arith.constant 0 : index
    %327 = vector.load %arg2[%326, %c0_138, %c0_139] : memref<52x1x512xf32, #tpu.memory_space<vmem>>, vector<1x1x512xf32>
    %328 = vector.shape_cast %327 : vector<1x1x512xf32> to vector<1x512xf32>
    %c46 = arith.constant 46 : index
    %c0_140 = arith.constant 0 : index
    %329 = vector.load %arg3[%c46, %c0_140] : memref<64x512xf32, #tpu.memory_space<vmem>>, vector<1x512xf32>
    tpu.vector_store %arg3[%c46, %c0_140], %328 {strides = array<i32>} : memref<64x512xf32, #tpu.memory_space<vmem>>, vector<1x512xf32>,
    %c47_i32 = arith.constant 47 : i32
    %330 = arith.addi %0, %c47_i32 : i32
    %331 = arith.index_cast %330 : i32 to index
    %332 = memref.load %arg1[%331] : memref<320xi32, #tpu.memory_space<smem>>
    %333 = arith.index_cast %332 : i32 to index
    %c0_141 = arith.constant 0 : index
    %c0_142 = arith.constant 0 : index
    %334 = vector.load %arg2[%333, %c0_141, %c0_142] : memref<52x1x512xf32, #tpu.memory_space<vmem>>, vector<1x1x512xf32>
    %335 = vector.shape_cast %334 : vector<1x1x512xf32> to vector<1x512xf32>
    %c47 = arith.constant 47 : index
    %c0_143 = arith.constant 0 : index
    %336 = vector.load %arg3[%c47, %c0_143] : memref<64x512xf32, #tpu.memory_space<vmem>>, vector<1x512xf32>
    tpu.vector_store %arg3[%c47, %c0_143], %335 {strides = array<i32>} : memref<64x512xf32, #tpu.memory_space<vmem>>, vector<1x512xf32>,
    %c48_i32 = arith.constant 48 : i32
    %337 = arith.addi %0, %c48_i32 : i32
    %338 = arith.index_cast %337 : i32 to index
    %339 = memref.load %arg1[%338] : memref<320xi32, #tpu.memory_space<smem>>
    %340 = arith.index_cast %339 : i32 to index
    %c0_144 = arith.constant 0 : index
    %c0_145 = arith.constant 0 : index
    %341 = vector.load %arg2[%340, %c0_144, %c0_145] : memref<52x1x512xf32, #tpu.memory_space<vmem>>, vector<1x1x512xf32>
    %342 = vector.shape_cast %341 : vector<1x1x512xf32> to vector<1x512xf32>
    %c48 = arith.constant 48 : index
    %c0_146 = arith.constant 0 : index
    %343 = vector.load %arg3[%c48, %c0_146] : memref<64x512xf32, #tpu.memory_space<vmem>>, vector<1x512xf32>
    tpu.vector_store %arg3[%c48, %c0_146], %342 {strides = array<i32>} : memref<64x512xf32, #tpu.memory_space<vmem>>, vector<1x512xf32>,
    %c49_i32 = arith.constant 49 : i32
    %344 = arith.addi %0, %c49_i32 : i32
    %345 = arith.index_cast %344 : i32 to index
    %346 = memref.load %arg1[%345] : memref<320xi32, #tpu.memory_space<smem>>
    %347 = arith.index_cast %346 : i32 to index
    %c0_147 = arith.constant 0 : index
    %c0_148 = arith.constant 0 : index
    %348 = vector.load %arg2[%347, %c0_147, %c0_148] : memref<52x1x512xf32, #tpu.memory_space<vmem>>, vector<1x1x512xf32>
    %349 = vector.shape_cast %348 : vector<1x1x512xf32> to vector<1x512xf32>
    %c49 = arith.constant 49 : index
    %c0_149 = arith.constant 0 : index
    %350 = vector.load %arg3[%c49, %c0_149] : memref<64x512xf32, #tpu.memory_space<vmem>>, vector<1x512xf32>
    tpu.vector_store %arg3[%c49, %c0_149], %349 {strides = array<i32>} : memref<64x512xf32, #tpu.memory_space<vmem>>, vector<1x512xf32>,
    %c50_i32 = arith.constant 50 : i32
    %351 = arith.addi %0, %c50_i32 : i32
    %352 = arith.index_cast %351 : i32 to index
    %353 = memref.load %arg1[%352] : memref<320xi32, #tpu.memory_space<smem>>
    %354 = arith.index_cast %353 : i32 to index
    %c0_150 = arith.constant 0 : index
    %c0_151 = arith.constant 0 : index
    %355 = vector.load %arg2[%354, %c0_150, %c0_151] : memref<52x1x512xf32, #tpu.memory_space<vmem>>, vector<1x1x512xf32>
    %356 = vector.shape_cast %355 : vector<1x1x512xf32> to vector<1x512xf32>
    %c50 = arith.constant 50 : index
    %c0_152 = arith.constant 0 : index
    %357 = vector.load %arg3[%c50, %c0_152] : memref<64x512xf32, #tpu.memory_space<vmem>>, vector<1x512xf32>
    tpu.vector_store %arg3[%c50, %c0_152], %356 {strides = array<i32>} : memref<64x512xf32, #tpu.memory_space<vmem>>, vector<1x512xf32>,
    %c51_i32 = arith.constant 51 : i32
    %358 = arith.addi %0, %c51_i32 : i32
    %359 = arith.index_cast %358 : i32 to index
    %360 = memref.load %arg1[%359] : memref<320xi32, #tpu.memory_space<smem>>
    %361 = arith.index_cast %360 : i32 to index
    %c0_153 = arith.constant 0 : index
    %c0_154 = arith.constant 0 : index
    %362 = vector.load %arg2[%361, %c0_153, %c0_154] : memref<52x1x512xf32, #tpu.memory_space<vmem>>, vector<1x1x512xf32>
    %363 = vector.shape_cast %362 : vector<1x1x512xf32> to vector<1x512xf32>
    %c51 = arith.constant 51 : index
    %c0_155 = arith.constant 0 : index
    %364 = vector.load %arg3[%c51, %c0_155] : memref<64x512xf32, #tpu.memory_space<vmem>>, vector<1x512xf32>
    tpu.vector_store %arg3[%c51, %c0_155], %363 {strides = array<i32>} : memref<64x512xf32, #tpu.memory_space<vmem>>, vector<1x512xf32>,
    %c52_i32 = arith.constant 52 : i32
    %365 = arith.addi %0, %c52_i32 : i32
    %366 = arith.index_cast %365 : i32 to index
    %367 = memref.load %arg1[%366] : memref<320xi32, #tpu.memory_space<smem>>
    %368 = arith.index_cast %367 : i32 to index
    %c0_156 = arith.constant 0 : index
    %c0_157 = arith.constant 0 : index
    %369 = vector.load %arg2[%368, %c0_156, %c0_157] : memref<52x1x512xf32, #tpu.memory_space<vmem>>, vector<1x1x512xf32>
    %370 = vector.shape_cast %369 : vector<1x1x512xf32> to vector<1x512xf32>
    %c52 = arith.constant 52 : index
    %c0_158 = arith.constant 0 : index
    %371 = vector.load %arg3[%c52, %c0_158] : memref<64x512xf32, #tpu.memory_space<vmem>>, vector<1x512xf32>
    tpu.vector_store %arg3[%c52, %c0_158], %370 {strides = array<i32>} : memref<64x512xf32, #tpu.memory_space<vmem>>, vector<1x512xf32>,
    %c53_i32 = arith.constant 53 : i32
    %372 = arith.addi %0, %c53_i32 : i32
    %373 = arith.index_cast %372 : i32 to index
    %374 = memref.load %arg1[%373] : memref<320xi32, #tpu.memory_space<smem>>
    %375 = arith.index_cast %374 : i32 to index
    %c0_159 = arith.constant 0 : index
    %c0_160 = arith.constant 0 : index
    %376 = vector.load %arg2[%375, %c0_159, %c0_160] : memref<52x1x512xf32, #tpu.memory_space<vmem>>, vector<1x1x512xf32>
    %377 = vector.shape_cast %376 : vector<1x1x512xf32> to vector<1x512xf32>
    %c53 = arith.constant 53 : index
    %c0_161 = arith.constant 0 : index
    %378 = vector.load %arg3[%c53, %c0_161] : memref<64x512xf32, #tpu.memory_space<vmem>>, vector<1x512xf32>
    tpu.vector_store %arg3[%c53, %c0_161], %377 {strides = array<i32>} : memref<64x512xf32, #tpu.memory_space<vmem>>, vector<1x512xf32>,
    %c54_i32 = arith.constant 54 : i32
    %379 = arith.addi %0, %c54_i32 : i32
    %380 = arith.index_cast %379 : i32 to index
    %381 = memref.load %arg1[%380] : memref<320xi32, #tpu.memory_space<smem>>
    %382 = arith.index_cast %381 : i32 to index
    %c0_162 = arith.constant 0 : index
    %c0_163 = arith.constant 0 : index
    %383 = vector.load %arg2[%382, %c0_162, %c0_163] : memref<52x1x512xf32, #tpu.memory_space<vmem>>, vector<1x1x512xf32>
    %384 = vector.shape_cast %383 : vector<1x1x512xf32> to vector<1x512xf32>
    %c54 = arith.constant 54 : index
    %c0_164 = arith.constant 0 : index
    %385 = vector.load %arg3[%c54, %c0_164] : memref<64x512xf32, #tpu.memory_space<vmem>>, vector<1x512xf32>
    tpu.vector_store %arg3[%c54, %c0_164], %384 {strides = array<i32>} : memref<64x512xf32, #tpu.memory_space<vmem>>, vector<1x512xf32>,
    %c55_i32 = arith.constant 55 : i32
    %386 = arith.addi %0, %c55_i32 : i32
    %387 = arith.index_cast %386 : i32 to index
    %388 = memref.load %arg1[%387] : memref<320xi32, #tpu.memory_space<smem>>
    %389 = arith.index_cast %388 : i32 to index
    %c0_165 = arith.constant 0 : index
    %c0_166 = arith.constant 0 : index
    %390 = vector.load %arg2[%389, %c0_165, %c0_166] : memref<52x1x512xf32, #tpu.memory_space<vmem>>, vector<1x1x512xf32>
    %391 = vector.shape_cast %390 : vector<1x1x512xf32> to vector<1x512xf32>
    %c55 = arith.constant 55 : index
    %c0_167 = arith.constant 0 : index
    %392 = vector.load %arg3[%c55, %c0_167] : memref<64x512xf32, #tpu.memory_space<vmem>>, vector<1x512xf32>
    tpu.vector_store %arg3[%c55, %c0_167], %391 {strides = array<i32>} : memref<64x512xf32, #tpu.memory_space<vmem>>, vector<1x512xf32>,
    %c56_i32 = arith.constant 56 : i32
    %393 = arith.addi %0, %c56_i32 : i32
    %394 = arith.index_cast %393 : i32 to index
    %395 = memref.load %arg1[%394] : memref<320xi32, #tpu.memory_space<smem>>
    %396 = arith.index_cast %395 : i32 to index
    %c0_168 = arith.constant 0 : index
    %c0_169 = arith.constant 0 : index
    %397 = vector.load %arg2[%396, %c0_168, %c0_169] : memref<52x1x512xf32, #tpu.memory_space<vmem>>, vector<1x1x512xf32>
    %398 = vector.shape_cast %397 : vector<1x1x512xf32> to vector<1x512xf32>
    %c56 = arith.constant 56 : index
    %c0_170 = arith.constant 0 : index
    %399 = vector.load %arg3[%c56, %c0_170] : memref<64x512xf32, #tpu.memory_space<vmem>>, vector<1x512xf32>
    tpu.vector_store %arg3[%c56, %c0_170], %398 {strides = array<i32>} : memref<64x512xf32, #tpu.memory_space<vmem>>, vector<1x512xf32>,
    %c57_i32 = arith.constant 57 : i32
    %400 = arith.addi %0, %c57_i32 : i32
    %401 = arith.index_cast %400 : i32 to index
    %402 = memref.load %arg1[%401] : memref<320xi32, #tpu.memory_space<smem>>
    %403 = arith.index_cast %402 : i32 to index
    %c0_171 = arith.constant 0 : index
    %c0_172 = arith.constant 0 : index
    %404 = vector.load %arg2[%403, %c0_171, %c0_172] : memref<52x1x512xf32, #tpu.memory_space<vmem>>, vector<1x1x512xf32>
    %405 = vector.shape_cast %404 : vector<1x1x512xf32> to vector<1x512xf32>
    %c57 = arith.constant 57 : index
    %c0_173 = arith.constant 0 : index
    %406 = vector.load %arg3[%c57, %c0_173] : memref<64x512xf32, #tpu.memory_space<vmem>>, vector<1x512xf32>
    tpu.vector_store %arg3[%c57, %c0_173], %405 {strides = array<i32>} : memref<64x512xf32, #tpu.memory_space<vmem>>, vector<1x512xf32>,
    %c58_i32 = arith.constant 58 : i32
    %407 = arith.addi %0, %c58_i32 : i32
    %408 = arith.index_cast %407 : i32 to index
    %409 = memref.load %arg1[%408] : memref<320xi32, #tpu.memory_space<smem>>
    %410 = arith.index_cast %409 : i32 to index
    %c0_174 = arith.constant 0 : index
    %c0_175 = arith.constant 0 : index
    %411 = vector.load %arg2[%410, %c0_174, %c0_175] : memref<52x1x512xf32, #tpu.memory_space<vmem>>, vector<1x1x512xf32>
    %412 = vector.shape_cast %411 : vector<1x1x512xf32> to vector<1x512xf32>
    %c58 = arith.constant 58 : index
    %c0_176 = arith.constant 0 : index
    %413 = vector.load %arg3[%c58, %c0_176] : memref<64x512xf32, #tpu.memory_space<vmem>>, vector<1x512xf32>
    tpu.vector_store %arg3[%c58, %c0_176], %412 {strides = array<i32>} : memref<64x512xf32, #tpu.memory_space<vmem>>, vector<1x512xf32>,
    %c59_i32 = arith.constant 59 : i32
    %414 = arith.addi %0, %c59_i32 : i32
    %415 = arith.index_cast %414 : i32 to index
    %416 = memref.load %arg1[%415] : memref<320xi32, #tpu.memory_space<smem>>
    %417 = arith.index_cast %416 : i32 to index
    %c0_177 = arith.constant 0 : index
    %c0_178 = arith.constant 0 : index
    %418 = vector.load %arg2[%417, %c0_177, %c0_178] : memref<52x1x512xf32, #tpu.memory_space<vmem>>, vector<1x1x512xf32>
    %419 = vector.shape_cast %418 : vector<1x1x512xf32> to vector<1x512xf32>
    %c59 = arith.constant 59 : index
    %c0_179 = arith.constant 0 : index
    %420 = vector.load %arg3[%c59, %c0_179] : memref<64x512xf32, #tpu.memory_space<vmem>>, vector<1x512xf32>
    tpu.vector_store %arg3[%c59, %c0_179], %419 {strides = array<i32>} : memref<64x512xf32, #tpu.memory_space<vmem>>, vector<1x512xf32>,
    %c60_i32 = arith.constant 60 : i32
    %421 = arith.addi %0, %c60_i32 : i32
    %422 = arith.index_cast %421 : i32 to index
    %423 = memref.load %arg1[%422] : memref<320xi32, #tpu.memory_space<smem>>
    %424 = arith.index_cast %423 : i32 to index
    %c0_180 = arith.constant 0 : index
    %c0_181 = arith.constant 0 : index
    %425 = vector.load %arg2[%424, %c0_180, %c0_181] : memref<52x1x512xf32, #tpu.memory_space<vmem>>, vector<1x1x512xf32>
    %426 = vector.shape_cast %425 : vector<1x1x512xf32> to vector<1x512xf32>
    %c60 = arith.constant 60 : index
    %c0_182 = arith.constant 0 : index
    %427 = vector.load %arg3[%c60, %c0_182] : memref<64x512xf32, #tpu.memory_space<vmem>>, vector<1x512xf32>
    tpu.vector_store %arg3[%c60, %c0_182], %426 {strides = array<i32>} : memref<64x512xf32, #tpu.memory_space<vmem>>, vector<1x512xf32>,
    %c61_i32 = arith.constant 61 : i32
    %428 = arith.addi %0, %c61_i32 : i32
    %429 = arith.index_cast %428 : i32 to index
    %430 = memref.load %arg1[%429] : memref<320xi32, #tpu.memory_space<smem>>
    %431 = arith.index_cast %430 : i32 to index
    %c0_183 = arith.constant 0 : index
    %c0_184 = arith.constant 0 : index
    %432 = vector.load %arg2[%431, %c0_183, %c0_184] : memref<52x1x512xf32, #tpu.memory_space<vmem>>, vector<1x1x512xf32>
    %433 = vector.shape_cast %432 : vector<1x1x512xf32> to vector<1x512xf32>
    %c61 = arith.constant 61 : index
    %c0_185 = arith.constant 0 : index
    %434 = vector.load %arg3[%c61, %c0_185] : memref<64x512xf32, #tpu.memory_space<vmem>>, vector<1x512xf32>
    tpu.vector_store %arg3[%c61, %c0_185], %433 {strides = array<i32>} : memref<64x512xf32, #tpu.memory_space<vmem>>, vector<1x512xf32>,
    %c62_i32 = arith.constant 62 : i32
    %435 = arith.addi %0, %c62_i32 : i32
    %436 = arith.index_cast %435 : i32 to index
    %437 = memref.load %arg1[%436] : memref<320xi32, #tpu.memory_space<smem>>
    %438 = arith.index_cast %437 : i32 to index
    %c0_186 = arith.constant 0 : index
    %c0_187 = arith.constant 0 : index
    %439 = vector.load %arg2[%438, %c0_186, %c0_187] : memref<52x1x512xf32, #tpu.memory_space<vmem>>, vector<1x1x512xf32>
    %440 = vector.shape_cast %439 : vector<1x1x512xf32> to vector<1x512xf32>
    %c62 = arith.constant 62 : index
    %c0_188 = arith.constant 0 : index
    %441 = vector.load %arg3[%c62, %c0_188] : memref<64x512xf32, #tpu.memory_space<vmem>>, vector<1x512xf32>
    tpu.vector_store %arg3[%c62, %c0_188], %440 {strides = array<i32>} : memref<64x512xf32, #tpu.memory_space<vmem>>, vector<1x512xf32>,
    %c63_i32 = arith.constant 63 : i32
    %442 = arith.addi %0, %c63_i32 : i32
    %443 = arith.index_cast %442 : i32 to index
    %444 = memref.load %arg1[%443] : memref<320xi32, #tpu.memory_space<smem>>
    %445 = arith.index_cast %444 : i32 to index
    %c0_189 = arith.constant 0 : index
    %c0_190 = arith.constant 0 : index
    %446 = vector.load %arg2[%445, %c0_189, %c0_190] : memref<52x1x512xf32, #tpu.memory_space<vmem>>, vector<1x1x512xf32>
    %447 = vector.shape_cast %446 : vector<1x1x512xf32> to vector<1x512xf32>
    %c63 = arith.constant 63 : index
    %c0_191 = arith.constant 0 : index
    %448 = vector.load %arg3[%c63, %c0_191] : memref<64x512xf32, #tpu.memory_space<vmem>>, vector<1x512xf32>
    tpu.vector_store %arg3[%c63, %c0_191], %447 {strides = array<i32>} : memref<64x512xf32, #tpu.memory_space<vmem>>, vector<1x512xf32>,
    return
  }
  func.func @transform_0(%arg0: i32, %arg1: memref<320xi32, #tpu.memory_space<smem>>) -> (i32, i32, i32) {
    %c0_i32 = arith.constant 0 : i32
    %c0_i32_0 = arith.constant 0 : i32
    %c0_i32_1 = arith.constant 0 : i32
    %c0_i32_2 = arith.constant 0 : i32
    return %c0_i32, %c0_i32_0, %c0_i32_1 : i32, i32, i32
  }
  func.func @transform_1(%arg0: i32, %arg1: memref<320xi32, #tpu.memory_space<smem>>) -> (i32, i32) {
    %c0_i32 = arith.constant 0 : i32
    %c0_i32_0 = arith.constant 0 : i32
    return %arg0, %c0_i32 : i32, i32
  }
}

</mosaic_0001>

<bundles_post_ra>
// kernel: tpu_custom_call.1
= control target key start
LH: loop header
LB: loop body
LE: loop exit
PB: predicated region body
PF: predicated region fallthrough
CT: control target
= control target key end

     0   :  { %s1581_s0 = inlined_call_operand.hbm [shape: s32[320], index: 0, kind: input, shape index: {}]   ;;  %s1582_s1 = inlined_call_operand.hbm [shape: f32[52,1,512], index: 1, kind: input, shape index: {}]   ;;  %s1583_s2 = inlined_call_operand.hbm [shape: f32[320,512], index: 2, kind: output, shape index: {}]  }
   0x1   :  { %s1033_s11 = scalar_lea.hbm %s1581_s0, 48  ;;  %s1035_s16 = scalar_lea.hbm %s1581_s0, 64 }
   0x2   :  { %p1034_p0 = scmp.ne.s32.totalorder %s1581_s0, %s1033_s11  ;;  %p1036_p1 = scmp.lt.u32.totalorder %s1035_s16, %s1033_s11 }
   0x3   :  { %p1037_p2 = scmp.lt.u32.totalorder %s1033_s11, %s1581_s0 }
   0x5   :  { %p1038_p3 = por %p1037_p2, %p1036_p1 }
   0x7   :  { %p1039_p4 = pnand %p1038_p3, %p1034_p0 }
   0x9   :  { %1042 = shalt.err (!%p1039_p4)  }
   0xa   :  { %s1141_s19 = smov [#allocation3]  }
   0xb   :  { %8 = dma.hbm_to_smem %s1581_s0, 48, %s1141_s19, [#allocation2] }
   0xc   :  { %1115 = dma.done.wait [#allocation2], 48 }
   0xd   :  { %1116 = vsyncadd [#allocation2], 4294967248 }
   0xe   :  { %10 = sfence }
   0xf   :  { %11 = vsyncpa [#allocation5], 0 }
  0x10   :  { %12 = vsyncpa [#allocation6], 0 }
  0x11   :  { %14 = vsyncpa [#allocation6 + $0x1], 0  ;;  %s1178_s22 = smov 0   ;;  %s1180_s23 = smov 0  }
  0x12   :  { %s1182_s24 = smov 0   ;;  %s1184_s25 = smov 0  }
  0x13 LB: > { %s1199_s0 = sadd.s32 4294967295, %s1139_s25   ;;  %s836_s26 = sadd.s32 4294967294, %s1139_s25   ;;  %s1139_s25 = sphi %s1184_s25, %s1601_s25   ;;  %s1135_s24 = sphi %s1182_s24, %s1600_s24   ;;  %s1131_s23 = sphi %s1180_s23, %s1599_s23   ;;  %s1127_s22 = sphi %s1178_s22, %s1598_s22  }
  0x14   : > { %s1203_s27 = sadd.s32 1, %s1139_s25   ;;  %s48_s28 = sadd.s32 1, %s1135_s24 }
  0x15   : > { %s45_s29 = ssub.s32 %s1139_s25, %s1203_s27  ;;  %p58_p5 = scmp.ne.s32.totalorder %s1135_s24, %s1131_s23 }
  0x16   : > { %p46_p6 = scmp.eq.s32.totalorder %s45_s29, 0  ;;  %p59_p7 = scmp.eq.s32.totalorder %s1199_s0, 4 }
  0x17   : > { %p64_p8 = scmp.ne.s32.totalorder %s1131_s23, %s1127_s22  ;;  %p65_p9 = scmp.eq.s32.totalorder %s836_s26, 4 }
  0x18   : > { %s1214_s30 = scalar_select %p46_p6, %s1135_s24, %s48_s28  }
  0x19   : > { %p1216_p10 = por %p59_p7, %p58_p5  ;;  %p1220_p11 = por %p65_p9, %p64_p8 }
  0x1a   : > { %p837_p12 = scmp.ge.s32.totalorder %s1139_s25, 1  ;;  %p72_p13 = scmp.lt.s32.totalorder %s1139_s25, 6 }
  0x1b   : > { %s1587_s3 = scalar_select %p1216_p10, 1, 0 }
  0x1c   : > { %s1588_s4 = scalar_select %p1220_p11, 1, 0 }
  0x1d   : > { %p1584_p0 = scmp.eq.s32.totalorder %s1199_s0, 0  ;;  %p1227_p1 = pnand %p837_p12, %p72_p13 }
  0x1e   : > { %s1142_s6 = smov [#allocation4]   ;;  %s1043_s11 = scalar_lea.hbm %s1582_s1, 3328 }
  0x1f   : > { %s1589_s5 = scalar_select %p1227_p1, 1, 0 }
  0x20   : > { %s84_s7 = sshll.u32 %s1142_s6, 4  ;;  %p984_p2 = pneg %p1227_p1  ;;  %s85_s7 = int_to_ptr.vmem [resolvable:$true] %s84_s7 }
  0x21   : > { %p1044_p4 = scmp.ne.s32.totalorder %s1582_s1, %s1043_s11  ;;  %p1050_p8 = scmp.lt.u32.totalorder %s1043_s11, %s1582_s1 }
  0x22   : > { %p1235_p3 = pnand %p1584_p0, %p984_p2 }
  0x24   : > { %p1045_p5 = pneg %p1235_p3 }
  0x26   : > { %p1046_p6 = pnand %p1045_p5, %p1044_p4 }
  0x28   : > { %p1047_p7 = pneg %p1046_p6 }
  0x2a   : > { %p1052_p9 = pnand %p1050_p8, %p1047_p7 }
  0x2c   : > { %1055 = shalt.err (!%p1052_p9)
}
  0x2d   : > { %s1056_s16 = scalar_lea.vmem %s85_s7, 3328  ;;  %p1064_p0 = scmp.lt.s32.totalorder %s85_s7, %s85_s7 }
  0x2e   : > { %p1057_p12 = scmp.ne.s32.totalorder %s85_s7, %s1056_s16  ;;  %p1065_p11 = scmp.lt.s32.totalorder %s1056_s16, %s1056_s16 }
  0x30   : > { %p1059_p13 = pnand %p1057_p12, %p1045_p5  ;;  %p1066_p10 = por %p1065_p11, %p1064_p0 }
  0x32   : > { %p1060_p2 = pneg %p1059_p13 }
  0x34   : > { %p1067_p1 = pnand %p1066_p10, %p1060_p2 }
  0x36   : > { %1070 = shalt.err (!%p1067_p1)
}
  0x37   : > { %s1143_s17 = smov 64   ;;  %s1144_s18 = smov 4  }
  0x38   : > { %987 = dma.hbm_to_vmem [thread:$0]  (!%p1235_p3), %s1582_s1, 3328, %s85_s7, [#allocation5], %s1143_s17, %s1143_s17, %s1144_s18  }
  0x39   : > { %p1591_p4 = scmp.ne.s32.totalorder %s1589_s5, 0 }
  0x3a   : > { %p1592_p6 = scmp.eq.s32.totalorder (!%p1591_p4), %s1199_s0, 0 }
  0x3b   : > { %100 = sbr.rel (%p1591_p4) target bundleno = 241 (0xf1), region = 24 }
  0x42   : > { %1118 = dma.done.wait (%p1592_p6), [#allocation5], 3328   ;;  %p1593_p5 = pmov %p1592_p6 }
  0x43   : > { %s112_s21 = sand.u32 1, %s1131_s23   ;;  %s1263_s26 = sshll.u32 %s1199_s0, 6  ;;  %v121_v0 = vlaneseq }
  0x44   : > { %1120 = vsyncadd (%p1593_p5), [#allocation5], 4294963968  ;;  %s841_s28 = sshll.u32 %s112_s21, 8  ;;  %s117_s29 = sld [smem:[#allocation3 + %s1263_s26]] }
  0x45   : > { %s127_s5 = sadd.s32 1, %s1263_s26  ;;  %s135_s6 = sadd.s32 2, %s1263_s26  ;;  %vm1272_vm0 = vcmp.lt.s32.totalorder %v121_v0, 512 }
  0x46   : > { %s128_s7 = sld [smem:[#allocation3 + %s127_s5]]  ;;  %s143_s9 = sadd.s32 3, %s1263_s26 }
  0x47   : > { %s136_s8 = sld [smem:[#allocation3 + %s135_s6]]  ;;  %s151_s10 = sadd.s32 4, %s1263_s26 }
  0x48   : > { %s144_s11 = sld [smem:[#allocation3 + %s143_s9]]  ;;  %s159_s14 = sadd.s32 5, %s1263_s26 }
  0x49   : > { %s152_s12 = sld [smem:[#allocation3 + %s151_s10]]  ;;  %s167_s17 = sadd.s32 6, %s1263_s26 }
  0x4a   : > { %s843_s13 = sshll.u32 %s117_s29, 2  ;;  %s160_s15 = sld [smem:[#allocation3 + %s159_s14]] }
  0x4b   : > { %s119_s16 = scalar_lea.vmem [#allocation4], %s843_s13  ;;  %s175_s18 = sadd.s32 7, %s1263_s26 }
  0x4c   : > { %v120_v2 = vld [vmem:[%s119_s16] sm:$0xf]  ;;  %s1279_s19 = scalar_lea.vmem [#allocation7], %s841_s28  ;;  %s844_s20 = sshll.u32 %s128_s7, 2 }
  0x4d   : > { %125 = vst.msk [vmem:[%s1279_s19] ss:$8 sm:$0xf] %vm1272_vm0, %v120_v2  ;;  %s846_s29 = sshll.u32 %s136_s8, 2  ;;  %s130_s5 = scalar_lea.vmem [#allocation4], %s844_s20 }
  0x4e   : > { %v131_v3 = vld [vmem:[%s130_s5] sm:$0xf]  ;;  %s138_s6 = scalar_lea.vmem [#allocation4], %s846_s29  ;;  %s848_s9 = sshll.u32 %s144_s11, 2 }
  0x4f   : > { %v139_v4 = vld [vmem:[%s138_s6] sm:$0xf]  ;;  %s850_s10 = sshll.u32 %s152_s12, 2  ;;  %845 = vst.msk [vmem:[%s1279_s19 + $0x1] ss:$8 sm:$0xf] %vm1272_vm0, %v131_v3 }
  0x50   : > { %847 = vst.msk [vmem:[%s1279_s19 + $0x2] ss:$8 sm:$0xf] %vm1272_vm0, %v139_v4  ;;  %s146_s28 = scalar_lea.vmem [#allocation4], %s848_s9  ;;  %s154_s7 = scalar_lea.vmem [#allocation4], %s850_s10 }
  0x51   : > { %v147_v5 = vld [vmem:[%s146_s28] sm:$0xf]  ;;  %s852_s8 = sshll.u32 %s160_s15, 2  ;;  %s168_s13 = sld [smem:[#allocation3 + %s167_s17]] }
  0x52   : > { %v155_v6 = vld [vmem:[%s154_s7] sm:$0xf]  ;;  %849 = vst.msk [vmem:[%s1279_s19 + $0x3] ss:$8 sm:$0xf] %vm1272_vm0, %v147_v5  ;;  %s176_s11 = sld [smem:[#allocation3 + %s175_s18]] }
  0x53   : > { %851 = vst.msk [vmem:[%s1279_s19 + $0x4] ss:$8 sm:$0xf] %vm1272_vm0, %v155_v6  ;;  %s162_s12 = scalar_lea.vmem [#allocation4], %s852_s8  ;;  %s183_s14 = sadd.s32 8, %s1263_s26 }
  0x54   : > { %v163_v7 = vld [vmem:[%s162_s12] sm:$0xf]  ;;  %s191_s16 = sadd.s32 9, %s1263_s26  ;;  %s184_s20 = sld [smem:[#allocation3 + %s183_s14]] }
  0x55   : > { %853 = vst.msk [vmem:[%s1279_s19 + $0x5] ss:$8 sm:$0xf] %vm1272_vm0, %v163_v7  ;;  %s192_s29 = sld [smem:[#allocation3 + %s191_s16]]  ;;  %s199_s15 = sadd.s32 10, %s1263_s26 }
  0x56   : > { %s207_s17 = sadd.s32 11, %s1263_s26  ;;  %s200_s5 = sld [smem:[#allocation3 + %s199_s15]] }
  0x57   : > { %s208_s6 = sld [smem:[#allocation3 + %s207_s17]]  ;;  %s854_s9 = sshll.u32 %s168_s13, 2 }
  0x58   : > { %s215_s10 = sadd.s32 12, %s1263_s26  ;;  %s856_s28 = sshll.u32 %s176_s11, 2 }
  0x59   : > { %s170_s18 = scalar_lea.vmem [#allocation4], %s854_s9  ;;  %s216_s7 = sld [smem:[#allocation3 + %s215_s10]] }
  0x5a   : > { %v171_v8 = vld [vmem:[%s170_s18] sm:$0xf]  ;;  %s178_s8 = scalar_lea.vmem [#allocation4], %s856_s28  ;;  %s858_s12 = sshll.u32 %s184_s20, 2 }
  0x5b   : > { %855 = vst.msk [vmem:[%s1279_s19 + $0x6] ss:$8 sm:$0xf] %vm1272_vm0, %v171_v8  ;;  %v179_v9 = vld [vmem:[%s178_s8] sm:$0xf]  ;;  %s860_s14 = sshll.u32 %s192_s29, 2 }
  0x5c   : > { %857 = vst.msk [vmem:[%s1279_s19 + $0x7] ss:$8 sm:$0xf] %vm1272_vm0, %v179_v9  ;;  %s186_s13 = scalar_lea.vmem [#allocation4], %s858_s12  ;;  %s194_s11 = scalar_lea.vmem [#allocation4], %s860_s14 }
  0x5d   : > { %v187_v10 = vld [vmem:[%s186_s13] sm:$0xf]  ;;  %s862_s16 = sshll.u32 %s200_s5, 2  ;;  %s864_s15 = sshll.u32 %s208_s6, 2 }
  0x5e   : > { %v195_v11 = vld [vmem:[%s194_s11] sm:$0xf]  ;;  %859 = vst.msk [vmem:[%s1279_s19 + $0x20] ss:$8 sm:$0xf] %vm1272_vm0, %v187_v10  ;;  %s202_s20 = scalar_lea.vmem [#allocation4], %s862_s16 }
  0x5f   : > { %861 = vst.msk [vmem:[%s1279_s19 + $0x21] ss:$8 sm:$0xf] %vm1272_vm0, %v195_v11  ;;  %v203_v12 = vld [vmem:[%s202_s20] sm:$0xf]  ;;  %s210_s29 = scalar_lea.vmem [#allocation4], %s864_s15 }
  0x60   : > { %v211_v13 = vld [vmem:[%s210_s29] sm:$0xf]  ;;  %s223_s17 = sadd.s32 13, %s1263_s26  ;;  %s231_s9 = sadd.s32 14, %s1263_s26 }
  0x61   : > { %863 = vst.msk [vmem:[%s1279_s19 + $0x22] ss:$8 sm:$0xf] %vm1272_vm0, %v203_v12  ;;  %865 = vst.msk [vmem:[%s1279_s19 + $0x23] ss:$8 sm:$0xf] %vm1272_vm0, %v211_v13 }
  0x62   : > { %s866_s5 = sshll.u32 %s216_s7, 2  ;;  %s224_s6 = sld [smem:[#allocation3 + %s223_s17]] }
  0x63   : > { %s232_s10 = sld [smem:[#allocation3 + %s231_s9]]  ;;  %s218_s28 = scalar_lea.vmem [#allocation4], %s866_s5 }
  0x64   : > { %v219_v14 = vld [vmem:[%s218_s28] sm:$0xf]  ;;  %s239_s18 = sadd.s32 15, %s1263_s26  ;;  %s247_s8 = sadd.s32 16, %s1263_s26 }
  0x65   : > { %867 = vst.msk [vmem:[%s1279_s19 + $0x24] ss:$8 sm:$0xf] %vm1272_vm0, %v219_v14  ;;  %s240_s12 = sld [smem:[#allocation3 + %s239_s18]]  ;;  %s255_s13 = sadd.s32 17, %s1263_s26 }
  0x66   : > { %s248_s14 = sld [smem:[#allocation3 + %s247_s8]]  ;;  %s263_s11 = sadd.s32 18, %s1263_s26 }
  0x67   : > { %s256_s16 = sld [smem:[#allocation3 + %s255_s13]]  ;;  %s271_s29 = sadd.s32 19, %s1263_s26 }
  0x68   : > { %s264_s15 = sld [smem:[#allocation3 + %s263_s11]]  ;;  %s868_s20 = sshll.u32 %s224_s6, 2 }
  0x69   : > { %s870_s7 = sshll.u32 %s232_s10, 2  ;;  %s226_s17 = scalar_lea.vmem [#allocation4], %s868_s20 }
  0x6a   : > { %v227_v15 = vld [vmem:[%s226_s17] sm:$0xf]  ;;  %s272_s9 = sld [smem:[#allocation3 + %s271_s29]]  ;;  %s234_s5 = scalar_lea.vmem [#allocation4], %s870_s7 }
  0x6b   : > { %869 = vst.msk [vmem:[%s1279_s19 + $0x25] ss:$8 sm:$0xf] %vm1272_vm0, %v227_v15  ;;  %v235_v16 = vld [vmem:[%s234_s5] sm:$0xf]  ;;  %s872_s28 = sshll.u32 %s240_s12, 2 }
  0x6c   : > { %s874_s18 = sshll.u32 %s248_s14, 2  ;;  %871 = vst.msk [vmem:[%s1279_s19 + $0x26] ss:$8 sm:$0xf] %vm1272_vm0, %v235_v16  ;;  %s242_s6 = scalar_lea.vmem [#allocation4], %s872_s28 }
  0x6d   : > { %v243_v17 = vld [vmem:[%s242_s6] sm:$0xf]  ;;  %s250_s10 = scalar_lea.vmem [#allocation4], %s874_s18  ;;  %s876_s8 = sshll.u32 %s256_s16, 2 }
  0x6e   : > { %v251_v18 = vld [vmem:[%s250_s10] sm:$0xf]  ;;  %s878_s13 = sshll.u32 %s264_s15, 2  ;;  %873 = vst.msk [vmem:[%s1279_s19 + $0x27] ss:$8 sm:$0xf] %vm1272_vm0, %v243_v17 }
  0x6f   : > { %875 = vst.msk [vmem:[%s1279_s19 + $0x40] ss:$8 sm:$0xf] %vm1272_vm0, %v251_v18  ;;  %s258_s12 = scalar_lea.vmem [#allocation4], %s876_s8  ;;  %s266_s14 = scalar_lea.vmem [#allocation4], %s878_s13 }
  0x70   : > { %v259_v19 = vld [vmem:[%s258_s12] sm:$0xf]  ;;  %s279_s11 = sadd.s32 20, %s1263_s26  ;;  %s287_s20 = sadd.s32 21, %s1263_s26 }
  0x71   : > { %v267_v20 = vld [vmem:[%s266_s14] sm:$0xf]  ;;  %877 = vst.msk [vmem:[%s1279_s19 + $0x41] ss:$8 sm:$0xf] %vm1272_vm0, %v259_v19  ;;  %s880_s16 = sshll.u32 %s272_s9, 2 }
  0x72   : > { %879 = vst.msk [vmem:[%s1279_s19 + $0x42] ss:$8 sm:$0xf] %vm1272_vm0, %v267_v20  ;;  %s280_s15 = sld [smem:[#allocation3 + %s279_s11]]  ;;  %s274_s7 = scalar_lea.vmem [#allocation4], %s880_s16 }
  0x73   : > { %s288_s29 = sld [smem:[#allocation3 + %s287_s20]]  ;;  %v275_v21 = vld [vmem:[%s274_s7] sm:$0xf]  ;;  %s295_s17 = sadd.s32 22, %s1263_s26 }
  0x74   : > { %s303_s5 = sadd.s32 23, %s1263_s26  ;;  %881 = vst.msk [vmem:[%s1279_s19 + $0x43] ss:$8 sm:$0xf] %vm1272_vm0, %v275_v21  ;;  %s296_s28 = sld [smem:[#allocation3 + %s295_s17]] }
  0x75   : > { %s304_s18 = sld [smem:[#allocation3 + %s303_s5]]  ;;  %s311_s6 = sadd.s32 24, %s1263_s26 }
  0x76   : > { %s319_s10 = sadd.s32 25, %s1263_s26  ;;  %s312_s8 = sld [smem:[#allocation3 + %s311_s6]] }
  0x77   : > { %s320_s13 = sld [smem:[#allocation3 + %s319_s10]]  ;;  %s327_s14 = sadd.s32 26, %s1263_s26 }
  0x78   : > { %s882_s12 = sshll.u32 %s280_s15, 2  ;;  %s328_s20 = sld [smem:[#allocation3 + %s327_s14]] }
  0x79   : > { %s884_s9 = sshll.u32 %s288_s29, 2  ;;  %s282_s11 = scalar_lea.vmem [#allocation4], %s882_s12 }
  0x7a   : > { %v283_v22 = vld [vmem:[%s282_s11] sm:$0xf]  ;;  %s290_s16 = scalar_lea.vmem [#allocation4], %s884_s9  ;;  %s886_s7 = sshll.u32 %s296_s28, 2 }
  0x7b   : > { %883 = vst.msk [vmem:[%s1279_s19 + $0x44] ss:$8 sm:$0xf] %vm1272_vm0, %v283_v22  ;;  %v291_v23 = vld [vmem:[%s290_s16] sm:$0xf]  ;;  %s888_s17 = sshll.u32 %s304_s18, 2 }
  0x7c   : > { %885 = vst.msk [vmem:[%s1279_s19 + $0x45] ss:$8 sm:$0xf] %vm1272_vm0, %v291_v23  ;;  %s298_s15 = scalar_lea.vmem [#allocation4], %s886_s7  ;;  %s306_s29 = scalar_lea.vmem [#allocation4], %s888_s17 }
  0x7d   : > { %v299_v24 = vld [vmem:[%s298_s15] sm:$0xf]  ;;  %s890_s5 = sshll.u32 %s312_s8, 2  ;;  %s892_s6 = sshll.u32 %s320_s13, 2 }
  0x7e   : > { %v307_v25 = vld [vmem:[%s306_s29] sm:$0xf]  ;;  %887 = vst.msk [vmem:[%s1279_s19 + $0x46] ss:$8 sm:$0xf] %vm1272_vm0, %v299_v24  ;;  %s314_s28 = scalar_lea.vmem [#allocation4], %s890_s5 }
  0x7f   : > { %889 = vst.msk [vmem:[%s1279_s19 + $0x47] ss:$8 sm:$0xf] %vm1272_vm0, %v307_v25  ;;  %v315_v26 = vld [vmem:[%s314_s28] sm:$0xf]  ;;  %s322_s18 = scalar_lea.vmem [#allocation4], %s892_s6 }
  0x80   : > { %v323_v27 = vld [vmem:[%s322_s18] sm:$0xf]  ;;  %s335_s10 = sadd.s32 27, %s1263_s26  ;;  %s343_s12 = sadd.s32 28, %s1263_s26 }
  0x81   : > { %891 = vst.msk [vmem:[%s1279_s19 + $0x60] ss:$8 sm:$0xf] %vm1272_vm0, %v315_v26  ;;  %893 = vst.msk [vmem:[%s1279_s19 + $0x61] ss:$8 sm:$0xf] %vm1272_vm0, %v323_v27 }
  0x82   : > { %s894_s8 = sshll.u32 %s328_s20, 2  ;;  %s336_s13 = sld [smem:[#allocation3 + %s335_s10]] }
  0x83   : > { %s344_s14 = sld [smem:[#allocation3 + %s343_s12]]  ;;  %s330_s9 = scalar_lea.vmem [#allocation4], %s894_s8 }
  0x84   : > { %v331_v28 = vld [vmem:[%s330_s9] sm:$0xf]  ;;  %s351_s11 = sadd.s32 29, %s1263_s26  ;;  %s359_s16 = sadd.s32 30, %s1263_s26 }
  0x85   : > { %895 = vst.msk [vmem:[%s1279_s19 + $0x62] ss:$8 sm:$0xf] %vm1272_vm0, %v331_v28  ;;  %s352_s7 = sld [smem:[#allocation3 + %s351_s11]]  ;;  %s367_s15 = sadd.s32 31, %s1263_s26 }
  0x86   : > { %s360_s17 = sld [smem:[#allocation3 + %s359_s16]]  ;;  %s375_s29 = sadd.s32 32, %s1263_s26 }
  0x87   : > { %s368_s5 = sld [smem:[#allocation3 + %s367_s15]]  ;;  %s383_s18 = sadd.s32 33, %s1263_s26 }
  0x88   : > { %s376_s6 = sld [smem:[#allocation3 + %s375_s29]]  ;;  %s896_s28 = sshll.u32 %s336_s13, 2 }
  0x89   : > { %s898_s20 = sshll.u32 %s344_s14, 2  ;;  %s338_s10 = scalar_lea.vmem [#allocation4], %s896_s28 }
  0x8a   : > { %v339_v29 = vld [vmem:[%s338_s10] sm:$0xf]  ;;  %s384_s12 = sld [smem:[#allocation3 + %s383_s18]]  ;;  %s346_s8 = scalar_lea.vmem [#allocation4], %s898_s20 }
  0x8b   : > { %897 = vst.msk [vmem:[%s1279_s19 + $0x63] ss:$8 sm:$0xf] %vm1272_vm0, %v339_v29  ;;  %v347_v30 = vld [vmem:[%s346_s8] sm:$0xf]  ;;  %s900_s9 = sshll.u32 %s352_s7, 2 }
  0x8c   : > { %s902_s11 = sshll.u32 %s360_s17, 2  ;;  %899 = vst.msk [vmem:[%s1279_s19 + $0x64] ss:$8 sm:$0xf] %vm1272_vm0, %v347_v30  ;;  %s354_s13 = scalar_lea.vmem [#allocation4], %s900_s9 }
  0x8d   : > { %v355_v31 = vld [vmem:[%s354_s13] sm:$0xf]  ;;  %s362_s14 = scalar_lea.vmem [#allocation4], %s902_s11  ;;  %s904_s16 = sshll.u32 %s368_s5, 2 }
  0x8e   : > { %v363_v32 = vld [vmem:[%s362_s14] sm:$0xf]  ;;  %s906_s15 = sshll.u32 %s376_s6, 2  ;;  %901 = vst.msk [vmem:[%s1279_s19 + $0x65] ss:$8 sm:$0xf] %vm1272_vm0, %v355_v31 }
  0x8f   : > { %903 = vst.msk [vmem:[%s1279_s19 + $0x66] ss:$8 sm:$0xf] %vm1272_vm0, %v363_v32  ;;  %s370_s7 = scalar_lea.vmem [#allocation4], %s904_s16  ;;  %s378_s17 = scalar_lea.vmem [#allocation4], %s906_s15 }
  0x90   : > { %v371_v33 = vld [vmem:[%s370_s7] sm:$0xf]  ;;  %s391_s29 = sadd.s32 34, %s1263_s26  ;;  %s399_s28 = sadd.s32 35, %s1263_s26 }
  0x91   : > { %v379_v34 = vld [vmem:[%s378_s17] sm:$0xf]  ;;  %905 = vst.msk [vmem:[%s1279_s19 + $0x67] ss:$8 sm:$0xf] %vm1272_vm0, %v371_v33  ;;  %s908_s5 = sshll.u32 %s384_s12, 2 }
  0x92   : > { %907 = vst.msk [vmem:[%s1279_s19 + $0x80] ss:$8 sm:$0xf] %vm1272_vm0, %v379_v34  ;;  %s392_s6 = sld [smem:[#allocation3 + %s391_s29]]  ;;  %s386_s20 = scalar_lea.vmem [#allocation4], %s908_s5 }
  0x93   : > { %s400_s18 = sld [smem:[#allocation3 + %s399_s28]]  ;;  %v387_v35 = vld [vmem:[%s386_s20] sm:$0xf]  ;;  %s407_s10 = sadd.s32 36, %s1263_s26 }
  0x94   : > { %s415_s8 = sadd.s32 37, %s1263_s26  ;;  %909 = vst.msk [vmem:[%s1279_s19 + $0x81] ss:$8 sm:$0xf] %vm1272_vm0, %v387_v35  ;;  %s408_s9 = sld [smem:[#allocation3 + %s407_s10]] }
  0x95   : > { %s416_s11 = sld [smem:[#allocation3 + %s415_s8]]  ;;  %s423_s13 = sadd.s32 38, %s1263_s26 }
  0x96   : > { %s431_s14 = sadd.s32 39, %s1263_s26  ;;  %s424_s16 = sld [smem:[#allocation3 + %s423_s13]] }
  0x97   : > { %s432_s15 = sld [smem:[#allocation3 + %s431_s14]]  ;;  %s439_s17 = sadd.s32 40, %s1263_s26 }
  0x98   : > { %s910_s7 = sshll.u32 %s392_s6, 2  ;;  %s440_s28 = sld [smem:[#allocation3 + %s439_s17]] }
  0x99   : > { %s912_s12 = sshll.u32 %s400_s18, 2  ;;  %s394_s29 = scalar_lea.vmem [#allocation4], %s910_s7 }
  0x9a   : > { %v395_v36 = vld [vmem:[%s394_s29] sm:$0xf]  ;;  %s402_s5 = scalar_lea.vmem [#allocation4], %s912_s12  ;;  %s914_s20 = sshll.u32 %s408_s9, 2 }
  0x9b   : > { %911 = vst.msk [vmem:[%s1279_s19 + $0x82] ss:$8 sm:$0xf] %vm1272_vm0, %v395_v36  ;;  %v403_v37 = vld [vmem:[%s402_s5] sm:$0xf]  ;;  %s916_s10 = sshll.u32 %s416_s11, 2 }
  0x9c   : > { %913 = vst.msk [vmem:[%s1279_s19 + $0x83] ss:$8 sm:$0xf] %vm1272_vm0, %v403_v37  ;;  %s410_s6 = scalar_lea.vmem [#allocation4], %s914_s20  ;;  %s418_s18 = scalar_lea.vmem [#allocation4], %s916_s10 }
  0x9d   : > { %v411_v38 = vld [vmem:[%s410_s6] sm:$0xf]  ;;  %s918_s8 = sshll.u32 %s424_s16, 2  ;;  %s920_s13 = sshll.u32 %s432_s15, 2 }
  0x9e   : > { %v419_v39 = vld [vmem:[%s418_s18] sm:$0xf]  ;;  %915 = vst.msk [vmem:[%s1279_s19 + $0x84] ss:$8 sm:$0xf] %vm1272_vm0, %v411_v38  ;;  %s426_s9 = scalar_lea.vmem [#allocation4], %s918_s8 }
  0x9f   : > { %917 = vst.msk [vmem:[%s1279_s19 + $0x85] ss:$8 sm:$0xf] %vm1272_vm0, %v419_v39  ;;  %v427_v40 = vld [vmem:[%s426_s9] sm:$0xf]  ;;  %s434_s11 = scalar_lea.vmem [#allocation4], %s920_s13 }
  0xa0   : > { %v435_v41 = vld [vmem:[%s434_s11] sm:$0xf]  ;;  %s447_s14 = sadd.s32 41, %s1263_s26  ;;  %s455_s7 = sadd.s32 42, %s1263_s26 }
  0xa1   : > { %919 = vst.msk [vmem:[%s1279_s19 + $0x86] ss:$8 sm:$0xf] %vm1272_vm0, %v427_v40  ;;  %921 = vst.msk [vmem:[%s1279_s19 + $0x87] ss:$8 sm:$0xf] %vm1272_vm0, %v435_v41 }
  0xa2   : > { %s922_s16 = sshll.u32 %s440_s28, 2  ;;  %s448_s15 = sld [smem:[#allocation3 + %s447_s14]] }
  0xa3   : > { %s456_s17 = sld [smem:[#allocation3 + %s455_s7]]  ;;  %s442_s12 = scalar_lea.vmem [#allocation4], %s922_s16 }
  0xa4   : > { %v443_v42 = vld [vmem:[%s442_s12] sm:$0xf]  ;;  %s463_s29 = sadd.s32 43, %s1263_s26  ;;  %s471_s5 = sadd.s32 44, %s1263_s26 }
  0xa5   : > { %923 = vst.msk [vmem:[%s1279_s19 + $0xa0] ss:$8 sm:$0xf] %vm1272_vm0, %v443_v42  ;;  %s464_s20 = sld [smem:[#allocation3 + %s463_s29]]  ;;  %s479_s6 = sadd.s32 45, %s1263_s26 }
  0xa6   : > { %s472_s10 = sld [smem:[#allocation3 + %s471_s5]]  ;;  %s487_s18 = sadd.s32 46, %s1263_s26 }
  0xa7   : > { %s480_s8 = sld [smem:[#allocation3 + %s479_s6]]  ;;  %s495_s11 = sadd.s32 47, %s1263_s26 }
  0xa8   : > { %s488_s13 = sld [smem:[#allocation3 + %s487_s18]]  ;;  %s924_s9 = sshll.u32 %s448_s15, 2 }
  0xa9   : > { %s926_s28 = sshll.u32 %s456_s17, 2  ;;  %s450_s14 = scalar_lea.vmem [#allocation4], %s924_s9 }
  0xaa   : > { %v451_v43 = vld [vmem:[%s450_s14] sm:$0xf]  ;;  %s496_s7 = sld [smem:[#allocation3 + %s495_s11]]  ;;  %s458_s16 = scalar_lea.vmem [#allocation4], %s926_s28 }
  0xab   : > { %925 = vst.msk [vmem:[%s1279_s19 + $0xa1] ss:$8 sm:$0xf] %vm1272_vm0, %v451_v43  ;;  %v459_v44 = vld [vmem:[%s458_s16] sm:$0xf]  ;;  %s928_s12 = sshll.u32 %s464_s20, 2 }
  0xac   : > { %s930_s29 = sshll.u32 %s472_s10, 2  ;;  %927 = vst.msk [vmem:[%s1279_s19 + $0xa2] ss:$8 sm:$0xf] %vm1272_vm0, %v459_v44  ;;  %s466_s15 = scalar_lea.vmem [#allocation4], %s928_s12 }
  0xad   : > { %v467_v45 = vld [vmem:[%s466_s15] sm:$0xf]  ;;  %s474_s17 = scalar_lea.vmem [#allocation4], %s930_s29  ;;  %s932_s5 = sshll.u32 %s480_s8, 2 }
  0xae   : > { %v475_v46 = vld [vmem:[%s474_s17] sm:$0xf]  ;;  %s934_s6 = sshll.u32 %s488_s13, 2  ;;  %929 = vst.msk [vmem:[%s1279_s19 + $0xa3] ss:$8 sm:$0xf] %vm1272_vm0, %v467_v45 }
  0xaf   : > { %931 = vst.msk [vmem:[%s1279_s19 + $0xa4] ss:$8 sm:$0xf] %vm1272_vm0, %v475_v46  ;;  %s482_s20 = scalar_lea.vmem [#allocation4], %s932_s5  ;;  %s490_s10 = scalar_lea.vmem [#allocation4], %s934_s6 }
  0xb0   : > { %v483_v47 = vld [vmem:[%s482_s20] sm:$0xf]  ;;  %s503_s18 = sadd.s32 48, %s1263_s26  ;;  %s511_s9 = sadd.s32 49, %s1263_s26 }
  0xb1   : > { %v491_v48 = vld [vmem:[%s490_s10] sm:$0xf]  ;;  %933 = vst.msk [vmem:[%s1279_s19 + $0xa5] ss:$8 sm:$0xf] %vm1272_vm0, %v483_v47  ;;  %s936_s8 = sshll.u32 %s496_s7, 2 }
  0xb2   : > { %935 = vst.msk [vmem:[%s1279_s19 + $0xa6] ss:$8 sm:$0xf] %vm1272_vm0, %v491_v48  ;;  %s504_s13 = sld [smem:[#allocation3 + %s503_s18]]  ;;  %s498_s28 = scalar_lea.vmem [#allocation4], %s936_s8 }
  0xb3   : > { %s512_s11 = sld [smem:[#allocation3 + %s511_s9]]  ;;  %v499_v49 = vld [vmem:[%s498_s28] sm:$0xf]  ;;  %s519_s14 = sadd.s32 50, %s1263_s26 }
  0xb4   : > { %s527_s16 = sadd.s32 51, %s1263_s26  ;;  %937 = vst.msk [vmem:[%s1279_s19 + $0xa7] ss:$8 sm:$0xf] %vm1272_vm0, %v499_v49  ;;  %s520_s12 = sld [smem:[#allocation3 + %s519_s14]] }
  0xb5   : > { %s528_s29 = sld [smem:[#allocation3 + %s527_s16]]  ;;  %s535_s15 = sadd.s32 52, %s1263_s26 }
  0xb6   : > { %s543_s17 = sadd.s32 53, %s1263_s26  ;;  %s536_s5 = sld [smem:[#allocation3 + %s535_s15]] }
  0xb7   : > { %s544_s6 = sld [smem:[#allocation3 + %s543_s17]]  ;;  %s551_s10 = sadd.s32 54, %s1263_s26 }
  0xb8   : > { %s938_s20 = sshll.u32 %s504_s13, 2  ;;  %s552_s9 = sld [smem:[#allocation3 + %s551_s10]] }
  0xb9   : > { %s940_s7 = sshll.u32 %s512_s11, 2  ;;  %s506_s18 = scalar_lea.vmem [#allocation4], %s938_s20 }
  0xba   : > { %v507_v50 = vld [vmem:[%s506_s18] sm:$0xf]  ;;  %s514_s8 = scalar_lea.vmem [#allocation4], %s940_s7  ;;  %s942_s28 = sshll.u32 %s520_s12, 2 }
  0xbb   : > { %939 = vst.msk [vmem:[%s1279_s19 + $0xc0] ss:$8 sm:$0xf] %vm1272_vm0, %v507_v50  ;;  %v515_v51 = vld [vmem:[%s514_s8] sm:$0xf]  ;;  %s944_s14 = sshll.u32 %s528_s29, 2 }
  0xbc   : > { %941 = vst.msk [vmem:[%s1279_s19 + $0xc1] ss:$8 sm:$0xf] %vm1272_vm0, %v515_v51  ;;  %s522_s13 = scalar_lea.vmem [#allocation4], %s942_s28  ;;  %s530_s11 = scalar_lea.vmem [#allocation4], %s944_s14 }
  0xbd   : > { %v523_v52 = vld [vmem:[%s522_s13] sm:$0xf]  ;;  %s946_s16 = sshll.u32 %s536_s5, 2  ;;  %s948_s15 = sshll.u32 %s544_s6, 2 }
  0xbe   : > { %v531_v53 = vld [vmem:[%s530_s11] sm:$0xf]  ;;  %943 = vst.msk [vmem:[%s1279_s19 + $0xc2] ss:$8 sm:$0xf] %vm1272_vm0, %v523_v52  ;;  %s538_s12 = scalar_lea.vmem [#allocation4], %s946_s16 }
  0xbf   : > { %945 = vst.msk [vmem:[%s1279_s19 + $0xc3] ss:$8 sm:$0xf] %vm1272_vm0, %v531_v53  ;;  %v539_v54 = vld [vmem:[%s538_s12] sm:$0xf]  ;;  %s546_s29 = scalar_lea.vmem [#allocation4], %s948_s15 }
  0xc0   : > { %v547_v55 = vld [vmem:[%s546_s29] sm:$0xf]  ;;  %s559_s17 = sadd.s32 55, %s1263_s26  ;;  %s567_s20 = sadd.s32 56, %s1263_s26 }
  0xc1   : > { %947 = vst.msk [vmem:[%s1279_s19 + $0xc4] ss:$8 sm:$0xf] %vm1272_vm0, %v539_v54  ;;  %949 = vst.msk [vmem:[%s1279_s19 + $0xc5] ss:$8 sm:$0xf] %vm1272_vm0, %v547_v55 }
  0xc2   : > { %s950_s5 = sshll.u32 %s552_s9, 2  ;;  %s560_s6 = sld [smem:[#allocation3 + %s559_s17]] }
  0xc3   : > { %s568_s10 = sld [smem:[#allocation3 + %s567_s20]]  ;;  %s554_s7 = scalar_lea.vmem [#allocation4], %s950_s5 }
  0xc4   : > { %v555_v56 = vld [vmem:[%s554_s7] sm:$0xf]  ;;  %s575_s18 = sadd.s32 57, %s1263_s26  ;;  %s583_s8 = sadd.s32 58, %s1263_s26 }
  0xc5   : > { %951 = vst.msk [vmem:[%s1279_s19 + $0xc6] ss:$8 sm:$0xf] %vm1272_vm0, %v555_v56  ;;  %s576_s28 = sld [smem:[#allocation3 + %s575_s18]]  ;;  %s591_s13 = sadd.s32 59, %s1263_s26 }
  0xc6   : > { %s584_s14 = sld [smem:[#allocation3 + %s583_s8]]  ;;  %s599_s11 = sadd.s32 60, %s1263_s26 }
  0xc7   : > { %s592_s16 = sld [smem:[#allocation3 + %s591_s13]]  ;;  %s607_s29 = sadd.s32 61, %s1263_s26 }
  0xc8   : > { %s600_s15 = sld [smem:[#allocation3 + %s599_s11]]  ;;  %s952_s12 = sshll.u32 %s560_s6, 2 }
  0xc9   : > { %s954_s9 = sshll.u32 %s568_s10, 2  ;;  %s562_s17 = scalar_lea.vmem [#allocation4], %s952_s12 }
  0xca   : > { %v563_v57 = vld [vmem:[%s562_s17] sm:$0xf]  ;;  %s608_s20 = sld [smem:[#allocation3 + %s607_s29]]  ;;  %s570_s5 = scalar_lea.vmem [#allocation4], %s954_s9 }
  0xcb   : > { %953 = vst.msk [vmem:[%s1279_s19 + $0xc7] ss:$8 sm:$0xf] %vm1272_vm0, %v563_v57  ;;  %v571_v58 = vld [vmem:[%s570_s5] sm:$0xf]  ;;  %s956_s7 = sshll.u32 %s576_s28, 2 }
  0xcc   : > { %s958_s18 = sshll.u32 %s584_s14, 2  ;;  %955 = vst.msk [vmem:[%s1279_s19 + $0xe0] ss:$8 sm:$0xf] %vm1272_vm0, %v571_v58  ;;  %s578_s6 = scalar_lea.vmem [#allocation4], %s956_s7 }
  0xcd   : > { %v579_v59 = vld [vmem:[%s578_s6] sm:$0xf]  ;;  %s586_s10 = scalar_lea.vmem [#allocation4], %s958_s18  ;;  %s960_s8 = sshll.u32 %s592_s16, 2 }
  0xce   : > { %v587_v60 = vld [vmem:[%s586_s10] sm:$0xf]  ;;  %s962_s13 = sshll.u32 %s600_s15, 2  ;;  %957 = vst.msk [vmem:[%s1279_s19 + $0xe1] ss:$8 sm:$0xf] %vm1272_vm0, %v579_v59 }
  0xcf   : > { %959 = vst.msk [vmem:[%s1279_s19 + $0xe2] ss:$8 sm:$0xf] %vm1272_vm0, %v587_v60  ;;  %s594_s28 = scalar_lea.vmem [#allocation4], %s960_s8  ;;  %s602_s14 = scalar_lea.vmem [#allocation4], %s962_s13 }
  0xd0   : > { %v595_v61 = vld [vmem:[%s594_s28] sm:$0xf]  ;;  %s615_s11 = sadd.s32 62, %s1263_s26  ;;  %s623_s12 = sadd.s32 63, %s1263_s26 }
  0xd1   : > { %v603_v62 = vld [vmem:[%s602_s14] sm:$0xf]  ;;  %961 = vst.msk [vmem:[%s1279_s19 + $0xe3] ss:$8 sm:$0xf] %vm1272_vm0, %v595_v61  ;;  %s964_s16 = sshll.u32 %s608_s20, 2 }
  0xd2   : > { %963 = vst.msk [vmem:[%s1279_s19 + $0xe4] ss:$8 sm:$0xf] %vm1272_vm0, %v603_v62  ;;  %s616_s15 = sld [smem:[#allocation3 + %s615_s11]]  ;;  %s610_s9 = scalar_lea.vmem [#allocation4], %s964_s16 }
  0xd3   : > { %s624_s29 = sld [smem:[#allocation3 + %s623_s12]]  ;;  %v611_v63 = vld [vmem:[%s610_s9] sm:$0xf]  ;;  %s977_s17 = sshll.u32 %s1199_s0, 12 }
  0xd4   : > { %s646_s5 = sshll.u32 %s1279_s19, 4  ;;  %965 = vst.msk [vmem:[%s1279_s19 + $0xe5] ss:$8 sm:$0xf] %vm1272_vm0, %v611_v63  ;;  %s1528_s18 = scalar_lea.hbm %s1583_s2, %s977_s17  ;;  %s1530_s5 = int_to_ptr.vmem [resolvable:$true] %s646_s5 }
  0xd5   : > { %s1540_s8 = scalar_lea.sflag [#allocation6], %s112_s21  ;;  %s1071_s13 = scalar_lea.vmem %s1530_s5, 4096 }
  0xd6   : > { %p1072_p10 = scmp.ne.s32.totalorder %s1530_s5, %s1071_s13  ;;  %p1596_p11 = scmp.ne.s32.totalorder %s1587_s3, 0 }
  0xd7   : > { %s1145_s28 = smov [#allocation7]  }
  0xd8   : > { %s966_s20 = sshll.u32 %s616_s15, 2  ;;  %p1073_p0 = pnand %p1072_p10, %p1596_p11 }
  0xd9   : > { %s968_s6 = sshll.u32 %s624_s29, 2  ;;  %s618_s10 = scalar_lea.vmem [#allocation4], %s966_s20 }
  0xda   : > { %v619_v0 = vld [vmem:[%s618_s10] sm:$0xf]  ;;  %s626_s0 = scalar_lea.vmem [#allocation4], %s968_s6  ;;  %p1074_p1 = pneg %p1073_p0 }
  0xdb   : > { %967 = vst.msk [vmem:[%s1279_s19 + $0xe6] ss:$8 sm:$0xf] %vm1272_vm0, %v619_v0  ;;  %v627_v2 = vld [vmem:[%s626_s0] sm:$0xf]  ;;  %s1075_s14 = sshll.u32 %s1145_s28, 4  ;;  %s1076_s14 = int_to_ptr.vmem [resolvable:$false] %s1075_s14 }
  0xdc   : > { %969 = vst.msk [vmem:[%s1279_s19 + $0xe7] ss:$8 sm:$0xf] %vm1272_vm0, %v627_v2  ;;  %s1077_s11 = scalar_lea.vmem %s1076_s14, 8192  ;;  %p1078_p3 = scmp.lt.s32.totalorder %s1530_s5, %s1076_s14 }
  0xdd   : > { %p1079_p7 = scmp.lt.s32.totalorder %s1077_s11, %s1071_s13 }
  0xdf   : > { %p1080_p8 = por %p1079_p7, %p1078_p3 }
  0xe1   : > { %p1081_p9 = pnand %p1080_p8, %p1074_p1 }
  0xe3   : > { %1084 = shalt.err (!%p1081_p9)
}
  0xe4   : > { %s1085_s21 = scalar_lea.hbm %s1528_s18, 4096  ;;  %s1089_s16 = scalar_lea.hbm %s1583_s2, 20480 }
  0xe5   : > { %p1086_p12 = scmp.ne.s32.totalorder %s1528_s18, %s1085_s21  ;;  %p1090_p4 = scmp.lt.u32.totalorder %s1528_s18, %s1583_s2 }
  0xe6   : > { %p1091_p6 = scmp.lt.u32.totalorder %s1089_s16, %s1085_s21  ;;  %p1093_p10 = scmp.lt.u32.totalorder %s1085_s21, %s1528_s18 }
  0xe7   : > { %p1087_p13 = pnand %p1086_p12, %p1596_p11 }
  0xe8   : > { %p1092_p5 = por %p1091_p6, %p1090_p4 }
  0xe9   : > { %p1088_p2 = pneg %p1087_p13 }
  0xea   : > { %p1094_p0 = por %p1093_p10, %p1092_p5 }
  0xec   : > { %p1095_p1 = pnand %p1094_p0, %p1088_p2 }
  0xee   : > { %1098 = shalt.err (!%p1095_p1)
}
  0xef   : > { %s1146_s9 = smov 512   ;;  %s1147_s17 = smov 32  }
  0xf0   : > { %982 = dma.vmem_to_hbm [thread:$0]  (%p1596_p11), %s1530_s5, 4096, %s1528_s18, %s1540_s8, %s1146_s9, %s1146_s9, %s1147_s17  }
  0xf1 PF: > { %p994_p3 = scmp.ge.s32.totalorder %s1139_s25, 2  ;;  %s661_s26 = sand.u32 1, %s1127_s22  }
  0xf2   : > { %p1597_p7 = scmp.ne.s32.totalorder %s1588_s4, 0  ;;  %s662_s7 = scalar_lea.sflag [#allocation6], %s661_s26 }
  0xf4   : > { %p989_p8 = pnand %p994_p3, %p1597_p7 }
  0xf6   : > { %1122 = dma.done.wait (!%p989_p8), %s662_s7, 4096  }
  0xf7   : > { %1124 = vsyncadd (!%p989_p8), %s662_s7, 4294963200  ;;  %p17_p9 = scmp.ge.s32.totalorder %s1203_s27, 7   ;;  %s1598_s22 = smov %s1131_s23 }
  0xf8   : > { %s1599_s23 = smov %s1135_s24  ;;  %s1600_s24 = smov %s1214_s30 }
  0xf9   : > { %s1601_s25 = smov %s1203_s27  ;;  %19 = sbr.rel (!%p17_p9) target bundleno = 19 (0x13), region = 188 }
 0x100   :  { %667 = vsyncpa [#allocation5], 1 }
 0x101   :  { %669 = vsyncpa [#allocation5 + $0x1], 1 }
 0x102   :  { %670 = vsyncpa [#allocation6], 1 }
 0x103   :  { %672 = vsyncpa [#allocation6 + $0x1], 1 }

</bundles_post_ra>
